<compile_context>
chip_gen: v7x
topology: tpu7x:2x2x1
jax: 0.10.0
libtpu: 0.0.40
codegen_flags: <defaults>
</compile_context>

<pallas_src>
import functools

import numpy as np
import jax
import jax.numpy as jnp
from jax.experimental import pallas as pl
from jax.experimental.pallas import tpu as pltpu


# ----------------------------------------------------------------------------
# Static plan: per-layer sizes and lane layouts (host-side Python ints only)
# ----------------------------------------------------------------------------
def build_plan(latent_dim, l_in, signal_len, n_batch):
    arch = [
        # (cin, cout, K, pad, relu, upsample_to)
        (latent_dim, 16, 3, 1, True, 16),
        (16, 32, 5, 2, True, 32),
        (32, 32, 5, 2, True, signal_len),
        (32, 16, 3, 1, True, None),
        (16, 1, 3, 1, False, None),
    ]
    layers = []
    sel_shapes = []
    prev_len, prev_stride, prev_total = l_in, l_in, n_batch * l_in
    up_count = 0
    for (cin, cout, k_sz, pad, relu, up_to) in arch:
        length = up_to if up_to is not None else prev_len   # per-sample conv len
        seg = length + 2 * pad                 # per-sample padded segment
        t_in = n_batch * seg                   # conv input lanes (whole batch)
        t_out = t_in - 2 * pad                 # conv output lanes (valid+junk)
        lay = dict(cin=cin, cout=cout, k=k_sz, pad=pad, length=length,
                   relu=relu, seg=seg, t_in=t_in, t_out=t_out,
                   up_idx=(up_count if up_to is not None else None),
                   src_total=prev_total, src_stride=prev_stride,
                   src_len=prev_len)
        if up_to is not None:
            sel_shapes.append((prev_total, t_in))
            up_count += 1
        layers.append(lay)
        prev_len, prev_stride, prev_total = length, seg, t_out
    return dict(layers=tuple(layers), n_batch=n_batch, signal_len=signal_len,
                sel_shapes=tuple(sel_shapes), out_stride=prev_stride)


# ----------------------------------------------------------------------------
# The fused Pallas kernel (single program, everything resident in VMEM)
# ----------------------------------------------------------------------------
def decoder_kernel(x_ref, w_ref, s_ref, shift_ref, o_ref, *pad_refs, plan):
    """x_ref:     (C0, N*L0)            lane-batched input
       w_ref:     (5, COUT_MAX, K*CIN)  BN-scale-folded weights, W_k blocks
       s_ref:     (3, SRC_MAX, DST_MAX) block-diag upsample+pad selection mats
       shift_ref: (5, COUT_MAX, 1)      bias + folded-BN shift (per channel)
       o_ref:     (1, N*signal_len)     lane-dense output row
       pad_refs:  VMEM scratch slabs for the non-upsampled conv inputs
    """
    n_batch = plan["n_batch"]
    signal_len = plan["signal_len"]

    # Zero the padded scratch slabs once; their halo lanes must read as 0
    # (data lanes are fully overwritten below).
    for buf in pad_refs:
        buf[...] = jnp.zeros(buf.shape, jnp.float32)

    h = x_ref[...].astype(jnp.float32)          # (C0, N*L0)
    pad_i = 0
    for li, lay in enumerate(plan["layers"]):
        cin, cout = lay["cin"], lay["cout"]
        k_sz, pad, length = lay["k"], lay["pad"], lay["length"]
        seg, t_in, t_out = lay["seg"], lay["t_in"], lay["t_out"]

        if lay["up_idx"] is not None:
            # nearest upsample + zero-pad for the whole batch in ONE matmul
            st = s_ref[lay["up_idx"], 0:lay["src_total"], 0:t_in]
            padded = jax.lax.dot_general(
                h, st, (((1,), (0,)), ((), ())),
                preferred_element_type=jnp.float32)            # (cin, t_in)
            read = lambda k, v=padded: v[:, k:k + t_out]
        else:
            # copy valid lanes of the previous output into the pre-zeroed slab
            buf = pad_refs[pad_i]
            pad_i += 1
            src_stride = lay["src_stride"]
            for n in range(n_batch):
                buf[:, n * seg + pad: n * seg + pad + length] = \
                    h[:, n * src_stride: n * src_stride + length]
            read = lambda k, b=buf: b[:, k:k + t_out]

        # conv (+ folded BN scale) = K accumulated MXU dots on shifted views
        acc = None
        for k in range(k_sz):
            wk = w_ref[li, 0:cout, k * cin:(k + 1) * cin]      # (cout, cin)
            dk = jax.lax.dot_general(
                wk, read(k), (((1,), (0,)), ((), ())),
                preferred_element_type=jnp.float32)            # (cout, t_out)
            acc = dk if acc is None else acc + dk

        h = acc + shift_ref[li, 0:cout, :]                     # bias + BN shift
        if lay["relu"]:
            h = jnp.maximum(h, 0.0)

    # lane-dense (1, N*signal_len) store (valid lanes only; junk lanes dropped)
    stride = plan["out_stride"]
    for n in range(n_batch):
        o_ref[:, n * signal_len:(n + 1) * signal_len] = \
            h[:, n * stride: n * stride + signal_len]


def decoder_forward(packed, x_ncl, *, plan):
    """Single fused pallas_call; input/output in PyTorch NCL layout."""
    w_pack, s_pack, shift_pack = packed
    n, c0, l0 = x_ncl.shape
    signal_len = plan["signal_len"]

    # NCL -> lane-batched (C, N*L): wrapper-side layout plumbing only.
    x_cl = jnp.transpose(x_ncl, (1, 0, 2)).reshape(c0, n * l0)

    scratch = [pltpu.VMEM((lay["cin"], lay["t_in"]), jnp.float32)
               for lay in plan["layers"] if lay["up_idx"] is None]

    flops = 0
    for lay in plan["layers"]:
        flops += 2 * lay["cout"] * lay["k"] * lay["cin"] * lay["t_out"]
        if lay["up_idx"] is not None:
            flops += 2 * lay["cin"] * lay["src_total"] * lay["t_in"]
    bytes_accessed = 4 * (x_cl.size + w_pack.size + s_pack.size
                          + shift_pack.size + n * signal_len)

    kernel = functools.partial(decoder_kernel, plan=plan)
    out = pl.pallas_call(
        kernel,
        out_shape=jax.ShapeDtypeStruct((1, n * signal_len), jnp.float32),
        in_specs=[pl.BlockSpec(memory_space=pltpu.MemorySpace.VMEM)] * 4,
        out_specs=pl.BlockSpec(memory_space=pltpu.MemorySpace.VMEM),
        scratch_shapes=scratch,
        cost_estimate=pl.CostEstimate(flops=int(flops), transcendentals=0,
                                      bytes_accessed=int(bytes_accessed)),
    )(x_cl, w_pack, s_pack, shift_pack)
    return out.reshape(n, 1, signal_len)


# ----------------------------------------------------------------------------
# Host-side parameter packing (done once, outside jit)
# ----------------------------------------------------------------------------
def pack_params(params, plan):
    layers = plan["layers"]
    n_batch = plan["n_batch"]
    cout_max = max(l["cout"] for l in layers)
    kcin_max = max(l["k"] * l["cin"] for l in layers)

    w_pack = np.zeros((len(layers), cout_max, kcin_max), np.float32)
    shift_pack = np.zeros((len(layers), cout_max, 1), np.float32)
    for i, (p, lay) in enumerate(zip(params, layers)):
        cin, cout, k_sz = lay["cin"], lay["cout"], lay["k"]
        w_kio = np.asarray(p["w"])                       # (K, Cin, Cout)
        scale = np.asarray(p["scale"]).reshape(-1)       # (Cout,) folded BN
        shift = np.asarray(p["shift"]).reshape(-1)       # (Cout,) shift + bias
        for k in range(k_sz):
            w_pack[i, :cout, k * cin:(k + 1) * cin] = w_kio[k].T * scale[:, None]
        shift_pack[i, :cout, 0] = shift

    # Block-diagonal nearest-upsample matrices with zero halo columns folded in
    src_max = max(s[0] for s in plan["sel_shapes"])
    dst_max = max(s[1] for s in plan["sel_shapes"])
    s_pack = np.zeros((len(plan["sel_shapes"]), src_max, dst_max), np.float32)
    up_i = 0
    for lay in layers:
        if lay["up_idx"] is None:
            continue
        src_len, src_stride = lay["src_len"], lay["src_stride"]
        length, pad, seg = lay["length"], lay["pad"], lay["seg"]
        for n in range(n_batch):
            for j in range(length):
                src = n * src_stride + (j * src_len) // length   # 'nearest'
                dst = n * seg + pad + j
                s_pack[up_i, src, dst] = 1.0
        up_i += 1

    return (jnp.asarray(w_pack), jnp.asarray(s_pack), jnp.asarray(shift_pack))


# ----------------------------------------------------------------------------
# Parameter construction (deterministic, synthetic) + BN (eval) folding
# ----------------------------------------------------------------------------
def fold_bn(conv_bias, gamma, beta, mean, var, eps=1e-5):
    inv = gamma / jnp.sqrt(var + eps)
    scale = inv
    shift = beta + inv * (conv_bias - mean)
    return scale.reshape(1, 1, -1), shift.reshape(1, 1, -1)


def make_layer_params(key, cin, cout, k, with_bn):
    ks = jax.random.split(key, 6)
    fan = cin * k
    w = jax.random.normal(ks[0], (k, cin, cout), jnp.float32) / jnp.sqrt(fan)
    b = jax.random.normal(ks[1], (cout,), jnp.float32) * 0.1
    if with_bn:
        gamma = 1.0 + 0.1 * jax.random.normal(ks[2], (cout,), jnp.float32)
        beta = 0.1 * jax.random.normal(ks[3], (cout,), jnp.float32)
        mean = 0.1 * jax.random.normal(ks[4], (cout,), jnp.float32)
        var = 0.5 + jnp.abs(jax.random.normal(ks[5], (cout,), jnp.float32))
        scale, shift = fold_bn(b, gamma, beta, mean, var)
    else:
        scale = jnp.ones((1, 1, cout), jnp.float32)
        shift = b.reshape(1, 1, cout)
    return {"w": w, "scale": scale, "shift": shift}


def init_decoder_params(key, latent_dim):
    ks = jax.random.split(key, 5)
    return [
        make_layer_params(ks[0], latent_dim, 16, 3, True),   # Conv+BN+ReLU
        make_layer_params(ks[1], 16, 32, 5, True),           # Conv+BN+ReLU
        make_layer_params(ks[2], 32, 32, 5, True),           # Conv+BN+ReLU
        make_layer_params(ks[3], 32, 16, 3, True),           # Conv+BN+ReLU
        make_layer_params(ks[4], 16, 1, 3, False),           # final Conv
    ]


# ----------------------------------------------------------------------------
# Pure-JAX reference (for correctness check)
# ----------------------------------------------------------------------------
def upsample_nearest(x_nlc, out_len):
    l_in = x_nlc.shape[1]
    idx = (jnp.arange(out_len) * l_in) // out_len
    return x_nlc[:, idx, :]


def ref_conv(x_nlc, w_kio, scale, shift, pad, relu):
    y = jax.lax.conv_general_dilated(
        x_nlc, w_kio, window_strides=(1,), padding=[(pad, pad)],
        dimension_numbers=("NWC", "WIO", "NWC"))
    y = y * scale + shift
    return jnp.maximum(y, 0.0) if relu else y


def ref_forward(params, x_ncl, signal_len):
    x = jnp.transpose(x_ncl, (0, 2, 1))
    x = upsample_nearest(x, 16)
    x = ref_conv(x, params[0]["w"], params[0]["scale"], params[0]["shift"], 1, True)
    x = upsample_nearest(x, 32)
    x = ref_conv(x, params[1]["w"], params[1]["scale"], params[1]["shift"], 2, True)
    x = upsample_nearest(x, signal_len)
    x = ref_conv(x, params[2]["w"], params[2]["scale"], params[2]["shift"], 2, True)
    x = ref_conv(x, params[3]["w"], params[3]["scale"], params[3]["shift"], 1, True)
    x = ref_conv(x, params[4]["w"], params[4]["scale"], params[4]["shift"], 1, False)
    return jnp.transpose(x, (0, 2, 1))


if __name__ == "__main__":
    LATENT_DIM = 4
    SIGNAL_LEN = 64
    N, L_IN = 2, 8

    key = jax.random.PRNGKey(0)
    k_params, k_x = jax.random.split(key)
    params = init_decoder_params(k_params, LATENT_DIM)

    x = jax.random.normal(k_x, (N, LATENT_DIM, L_IN), jnp.float32)  # NCL input

    plan = build_plan(LATENT_DIM, L_IN, SIGNAL_LEN, N)
    packed = pack_params(params, plan)            # one-time host packing

    fwd = jax.jit(functools.partial(decoder_forward, plan=plan))
    out = jax.block_until_ready(fwd(packed, x))
    assert out.shape == (N, 1, SIGNAL_LEN), out.shape

    ref = ref_forward(params, x, SIGNAL_LEN)
    max_err = float(jnp.max(jnp.abs(out - ref)))
    assert jnp.allclose(out, ref, atol=5e-4, rtol=5e-4), max_err

    print("KERNEL_OK")
</pallas_src>

<mosaic_0001>
module attributes {stable_mosaic.version = 11 : i64} {
  func.func @decoder_kernel(%arg0: memref<4x16xf32, #tpu.memory_space<vmem>>, %arg1: memref<5x32x160xf32, #tpu.memory_space<vmem>>, %arg2: memref<3x68x136xf32, #tpu.memory_space<vmem>>, %arg3: memref<5x32x1xf32, #tpu.memory_space<vmem>>, %arg4: memref<1x128xf32, #tpu.memory_space<vmem>>, %arg5: memref<32x132xf32, #tpu.memory_space<vmem>>, %arg6: memref<16x132xf32, #tpu.memory_space<vmem>>) attributes {dimension_semantics = [], scalar_prefetch = 0 : i64, scratch_operands = 2 : i64, tpu.core_type = #tpu.core_type<tc>} {
    %cst = arith.constant 0.000000e+00 : f32
    %0 = vector.broadcast %cst : f32 to vector<32x132xf32>
    %c0 = arith.constant 0 : index
    %c0_0 = arith.constant 0 : index
    %1 = vector.load %arg5[%c0, %c0_0] : memref<32x132xf32, #tpu.memory_space<vmem>>, vector<32x132xf32>
    tpu.vector_store %arg5[%c0, %c0_0], %0 {strides = array<i32>} : memref<32x132xf32, #tpu.memory_space<vmem>>, vector<32x132xf32>,
    %cst_1 = arith.constant 0.000000e+00 : f32
    %2 = vector.broadcast %cst_1 : f32 to vector<16x132xf32>
    %c0_2 = arith.constant 0 : index
    %c0_3 = arith.constant 0 : index
    %3 = vector.load %arg6[%c0_2, %c0_3] : memref<16x132xf32, #tpu.memory_space<vmem>>, vector<16x132xf32>
    tpu.vector_store %arg6[%c0_2, %c0_3], %2 {strides = array<i32>} : memref<16x132xf32, #tpu.memory_space<vmem>>, vector<16x132xf32>,
    %c0_4 = arith.constant 0 : index
    %c0_5 = arith.constant 0 : index
    %4 = vector.load %arg0[%c0_4, %c0_5] : memref<4x16xf32, #tpu.memory_space<vmem>>, vector<4x16xf32>
    %c0_6 = arith.constant 0 : index
    %c0_7 = arith.constant 0 : index
    %c0_8 = arith.constant 0 : index
    %5 = vector.load %arg2[%c0_6, %c0_7, %c0_8] : memref<3x68x136xf32, #tpu.memory_space<vmem>>, vector<1x16x36xf32>
    %6 = vector.shape_cast %5 : vector<1x16x36xf32> to vector<16x36xf32>
    %cst_9 = arith.constant dense<0.000000e+00> : vector<4x36xf32>
    %7 = tpu.matmul %4, %6, %cst_9 {dimension_numbers = #tpu.dot_dimension_numbers<[1], [0], [0], [1], [0, 0, 1, 1], [], []>} : vector<4x16xf32>, vector<16x36xf32>, vector<4x36xf32> -> vector<4x36xf32>
    %c0_10 = arith.constant 0 : index
    %c0_11 = arith.constant 0 : index
    %c0_12 = arith.constant 0 : index
    %8 = vector.load %arg1[%c0_10, %c0_11, %c0_12] : memref<5x32x160xf32, #tpu.memory_space<vmem>>, vector<1x16x4xf32>
    %9 = vector.shape_cast %8 : vector<1x16x4xf32> to vector<16x4xf32>
    %10 = vector.extract_strided_slice %7 {offsets = [0, 0], sizes = [4, 34], strides = [1, 1]} : vector<4x36xf32> to vector<4x34xf32>
    %cst_13 = arith.constant dense<0.000000e+00> : vector<16x34xf32>
    %11 = tpu.matmul %9, %10, %cst_13 {dimension_numbers = #tpu.dot_dimension_numbers<[1], [0], [0], [1], [0, 0, 1, 1], [], []>} : vector<16x4xf32>, vector<4x34xf32>, vector<16x34xf32> -> vector<16x34xf32>
    %c0_14 = arith.constant 0 : index
    %c0_15 = arith.constant 0 : index
    %c4 = arith.constant 4 : index
    %12 = vector.load %arg1[%c0_14, %c0_15, %c4] : memref<5x32x160xf32, #tpu.memory_space<vmem>>, vector<1x16x4xf32>
    %13 = vector.shape_cast %12 : vector<1x16x4xf32> to vector<16x4xf32>
    %14 = vector.extract_strided_slice %7 {offsets = [0, 1], sizes = [4, 34], strides = [1, 1]} : vector<4x36xf32> to vector<4x34xf32>
    %cst_16 = arith.constant dense<0.000000e+00> : vector<16x34xf32>
    %15 = tpu.matmul %13, %14, %cst_16 {dimension_numbers = #tpu.dot_dimension_numbers<[1], [0], [0], [1], [0, 0, 1, 1], [], []>} : vector<16x4xf32>, vector<4x34xf32>, vector<16x34xf32> -> vector<16x34xf32>
    %16 = arith.addf %11, %15 : vector<16x34xf32>
    %c0_17 = arith.constant 0 : index
    %c0_18 = arith.constant 0 : index
    %c8 = arith.constant 8 : index
    %17 = vector.load %arg1[%c0_17, %c0_18, %c8] : memref<5x32x160xf32, #tpu.memory_space<vmem>>, vector<1x16x4xf32>
    %18 = vector.shape_cast %17 : vector<1x16x4xf32> to vector<16x4xf32>
    %19 = vector.extract_strided_slice %7 {offsets = [0, 2], sizes = [4, 34], strides = [1, 1]} : vector<4x36xf32> to vector<4x34xf32>
    %cst_19 = arith.constant dense<0.000000e+00> : vector<16x34xf32>
    %20 = tpu.matmul %18, %19, %cst_19 {dimension_numbers = #tpu.dot_dimension_numbers<[1], [0], [0], [1], [0, 0, 1, 1], [], []>} : vector<16x4xf32>, vector<4x34xf32>, vector<16x34xf32> -> vector<16x34xf32>
    %21 = arith.addf %16, %20 : vector<16x34xf32>
    %c0_20 = arith.constant 0 : index
    %c0_21 = arith.constant 0 : index
    %c0_22 = arith.constant 0 : index
    %22 = vector.load %arg3[%c0_20, %c0_21, %c0_22] : memref<5x32x1xf32, #tpu.memory_space<vmem>>, vector<1x16x1xf32>
    %23 = vector.shape_cast %22 : vector<1x16x1xf32> to vector<16x1xf32>
    %24 = vector.broadcast %23 : vector<16x1xf32> to vector<16x34xf32>
    %25 = arith.addf %21, %24 : vector<16x34xf32>
    %cst_23 = arith.constant 0.000000e+00 : f32
    %26 = vector.broadcast %cst_23 : f32 to vector<16x34xf32>
    %27 = arith.maximumf %25, %26 : vector<16x34xf32>
    %c1 = arith.constant 1 : index
    %c0_24 = arith.constant 0 : index
    %c0_25 = arith.constant 0 : index
    %28 = vector.load %arg2[%c1, %c0_24, %c0_25] : memref<3x68x136xf32, #tpu.memory_space<vmem>>, vector<1x34x72xf32>
    %29 = vector.shape_cast %28 : vector<1x34x72xf32> to vector<34x72xf32>
    %cst_26 = arith.constant dense<0.000000e+00> : vector<16x72xf32>
    %30 = tpu.matmul %27, %29, %cst_26 {dimension_numbers = #tpu.dot_dimension_numbers<[1], [0], [0], [1], [0, 0, 1, 1], [], []>} : vector<16x34xf32>, vector<34x72xf32>, vector<16x72xf32> -> vector<16x72xf32>
    %c1_27 = arith.constant 1 : index
    %c0_28 = arith.constant 0 : index
    %c0_29 = arith.constant 0 : index
    %31 = vector.load %arg1[%c1_27, %c0_28, %c0_29] : memref<5x32x160xf32, #tpu.memory_space<vmem>>, vector<1x32x16xf32>
    %32 = vector.shape_cast %31 : vector<1x32x16xf32> to vector<32x16xf32>
    %33 = vector.extract_strided_slice %30 {offsets = [0, 0], sizes = [16, 68], strides = [1, 1]} : vector<16x72xf32> to vector<16x68xf32>
    %cst_30 = arith.constant dense<0.000000e+00> : vector<32x68xf32>
    %34 = tpu.matmul %32, %33, %cst_30 {dimension_numbers = #tpu.dot_dimension_numbers<[1], [0], [0], [1], [0, 0, 1, 1], [], []>} : vector<32x16xf32>, vector<16x68xf32>, vector<32x68xf32> -> vector<32x68xf32>
    %c1_31 = arith.constant 1 : index
    %c0_32 = arith.constant 0 : index
    %c16 = arith.constant 16 : index
    %35 = vector.load %arg1[%c1_31, %c0_32, %c16] : memref<5x32x160xf32, #tpu.memory_space<vmem>>, vector<1x32x16xf32>
    %36 = vector.shape_cast %35 : vector<1x32x16xf32> to vector<32x16xf32>
    %37 = vector.extract_strided_slice %30 {offsets = [0, 1], sizes = [16, 68], strides = [1, 1]} : vector<16x72xf32> to vector<16x68xf32>
    %cst_33 = arith.constant dense<0.000000e+00> : vector<32x68xf32>
    %38 = tpu.matmul %36, %37, %cst_33 {dimension_numbers = #tpu.dot_dimension_numbers<[1], [0], [0], [1], [0, 0, 1, 1], [], []>} : vector<32x16xf32>, vector<16x68xf32>, vector<32x68xf32> -> vector<32x68xf32>
    %39 = arith.addf %34, %38 : vector<32x68xf32>
    %c1_34 = arith.constant 1 : index
    %c0_35 = arith.constant 0 : index
    %c32 = arith.constant 32 : index
    %40 = vector.load %arg1[%c1_34, %c0_35, %c32] : memref<5x32x160xf32, #tpu.memory_space<vmem>>, vector<1x32x16xf32>
    %41 = vector.shape_cast %40 : vector<1x32x16xf32> to vector<32x16xf32>
    %42 = vector.extract_strided_slice %30 {offsets = [0, 2], sizes = [16, 68], strides = [1, 1]} : vector<16x72xf32> to vector<16x68xf32>
    %cst_36 = arith.constant dense<0.000000e+00> : vector<32x68xf32>
    %43 = tpu.matmul %41, %42, %cst_36 {dimension_numbers = #tpu.dot_dimension_numbers<[1], [0], [0], [1], [0, 0, 1, 1], [], []>} : vector<32x16xf32>, vector<16x68xf32>, vector<32x68xf32> -> vector<32x68xf32>
    %44 = arith.addf %39, %43 : vector<32x68xf32>
    %c1_37 = arith.constant 1 : index
    %c0_38 = arith.constant 0 : index
    %c48 = arith.constant 48 : index
    %45 = vector.load %arg1[%c1_37, %c0_38, %c48] : memref<5x32x160xf32, #tpu.memory_space<vmem>>, vector<1x32x16xf32>
    %46 = vector.shape_cast %45 : vector<1x32x16xf32> to vector<32x16xf32>
    %47 = vector.extract_strided_slice %30 {offsets = [0, 3], sizes = [16, 68], strides = [1, 1]} : vector<16x72xf32> to vector<16x68xf32>
    %cst_39 = arith.constant dense<0.000000e+00> : vector<32x68xf32>
    %48 = tpu.matmul %46, %47, %cst_39 {dimension_numbers = #tpu.dot_dimension_numbers<[1], [0], [0], [1], [0, 0, 1, 1], [], []>} : vector<32x16xf32>, vector<16x68xf32>, vector<32x68xf32> -> vector<32x68xf32>
    %49 = arith.addf %44, %48 : vector<32x68xf32>
    %c1_40 = arith.constant 1 : index
    %c0_41 = arith.constant 0 : index
    %c64 = arith.constant 64 : index
    %50 = vector.load %arg1[%c1_40, %c0_41, %c64] : memref<5x32x160xf32, #tpu.memory_space<vmem>>, vector<1x32x16xf32>
    %51 = vector.shape_cast %50 : vector<1x32x16xf32> to vector<32x16xf32>
    %52 = vector.extract_strided_slice %30 {offsets = [0, 4], sizes = [16, 68], strides = [1, 1]} : vector<16x72xf32> to vector<16x68xf32>
    %cst_42 = arith.constant dense<0.000000e+00> : vector<32x68xf32>
    %53 = tpu.matmul %51, %52, %cst_42 {dimension_numbers = #tpu.dot_dimension_numbers<[1], [0], [0], [1], [0, 0, 1, 1], [], []>} : vector<32x16xf32>, vector<16x68xf32>, vector<32x68xf32> -> vector<32x68xf32>
    %54 = arith.addf %49, %53 : vector<32x68xf32>
    %c1_43 = arith.constant 1 : index
    %c0_44 = arith.constant 0 : index
    %c0_45 = arith.constant 0 : index
    %55 = vector.load %arg3[%c1_43, %c0_44, %c0_45] : memref<5x32x1xf32, #tpu.memory_space<vmem>>, vector<1x32x1xf32>
    %56 = vector.shape_cast %55 : vector<1x32x1xf32> to vector<32x1xf32>
    %57 = vector.broadcast %56 : vector<32x1xf32> to vector<32x68xf32>
    %58 = arith.addf %54, %57 : vector<32x68xf32>
    %cst_46 = arith.constant 0.000000e+00 : f32
    %59 = vector.broadcast %cst_46 : f32 to vector<32x68xf32>
    %60 = arith.maximumf %58, %59 : vector<32x68xf32>
    %c2 = arith.constant 2 : index
    %c0_47 = arith.constant 0 : index
    %c0_48 = arith.constant 0 : index
    %61 = vector.load %arg2[%c2, %c0_47, %c0_48] : memref<3x68x136xf32, #tpu.memory_space<vmem>>, vector<1x68x136xf32>
    %62 = vector.shape_cast %61 : vector<1x68x136xf32> to vector<68x136xf32>
    %cst_49 = arith.constant dense<0.000000e+00> : vector<32x136xf32>
    %63 = tpu.matmul %60, %62, %cst_49 {dimension_numbers = #tpu.dot_dimension_numbers<[1], [0], [0], [1], [0, 0, 1, 1], [], []>} : vector<32x68xf32>, vector<68x136xf32>, vector<32x136xf32> -> vector<32x136xf32>
    %c2_50 = arith.constant 2 : index
    %c0_51 = arith.constant 0 : index
    %c0_52 = arith.constant 0 : index
    %64 = vector.load %arg1[%c2_50, %c0_51, %c0_52] : memref<5x32x160xf32, #tpu.memory_space<vmem>>, vector<1x32x32xf32>
    %65 = vector.shape_cast %64 : vector<1x32x32xf32> to vector<32x32xf32>
    %66 = vector.extract_strided_slice %63 {offsets = [0, 0], sizes = [32, 132], strides = [1, 1]} : vector<32x136xf32> to vector<32x132xf32>
    %cst_53 = arith.constant dense<0.000000e+00> : vector<32x132xf32>
    %67 = tpu.matmul %65, %66, %cst_53 {dimension_numbers = #tpu.dot_dimension_numbers<[1], [0], [0], [1], [0, 0, 1, 1], [], []>} : vector<32x32xf32>, vector<32x132xf32>, vector<32x132xf32> -> vector<32x132xf32>
    %c2_54 = arith.constant 2 : index
    %c0_55 = arith.constant 0 : index
    %c32_56 = arith.constant 32 : index
    %68 = vector.load %arg1[%c2_54, %c0_55, %c32_56] : memref<5x32x160xf32, #tpu.memory_space<vmem>>, vector<1x32x32xf32>
    %69 = vector.shape_cast %68 : vector<1x32x32xf32> to vector<32x32xf32>
    %70 = vector.extract_strided_slice %63 {offsets = [0, 1], sizes = [32, 132], strides = [1, 1]} : vector<32x136xf32> to vector<32x132xf32>
    %cst_57 = arith.constant dense<0.000000e+00> : vector<32x132xf32>
    %71 = tpu.matmul %69, %70, %cst_57 {dimension_numbers = #tpu.dot_dimension_numbers<[1], [0], [0], [1], [0, 0, 1, 1], [], []>} : vector<32x32xf32>, vector<32x132xf32>, vector<32x132xf32> -> vector<32x132xf32>
    %72 = arith.addf %67, %71 : vector<32x132xf32>
    %c2_58 = arith.constant 2 : index
    %c0_59 = arith.constant 0 : index
    %c64_60 = arith.constant 64 : index
    %73 = vector.load %arg1[%c2_58, %c0_59, %c64_60] : memref<5x32x160xf32, #tpu.memory_space<vmem>>, vector<1x32x32xf32>
    %74 = vector.shape_cast %73 : vector<1x32x32xf32> to vector<32x32xf32>
    %75 = vector.extract_strided_slice %63 {offsets = [0, 2], sizes = [32, 132], strides = [1, 1]} : vector<32x136xf32> to vector<32x132xf32>
    %cst_61 = arith.constant dense<0.000000e+00> : vector<32x132xf32>
    %76 = tpu.matmul %74, %75, %cst_61 {dimension_numbers = #tpu.dot_dimension_numbers<[1], [0], [0], [1], [0, 0, 1, 1], [], []>} : vector<32x32xf32>, vector<32x132xf32>, vector<32x132xf32> -> vector<32x132xf32>
    %77 = arith.addf %72, %76 : vector<32x132xf32>
    %c2_62 = arith.constant 2 : index
    %c0_63 = arith.constant 0 : index
    %c96 = arith.constant 96 : index
    %78 = vector.load %arg1[%c2_62, %c0_63, %c96] : memref<5x32x160xf32, #tpu.memory_space<vmem>>, vector<1x32x32xf32>
    %79 = vector.shape_cast %78 : vector<1x32x32xf32> to vector<32x32xf32>
    %80 = vector.extract_strided_slice %63 {offsets = [0, 3], sizes = [32, 132], strides = [1, 1]} : vector<32x136xf32> to vector<32x132xf32>
    %cst_64 = arith.constant dense<0.000000e+00> : vector<32x132xf32>
    %81 = tpu.matmul %79, %80, %cst_64 {dimension_numbers = #tpu.dot_dimension_numbers<[1], [0], [0], [1], [0, 0, 1, 1], [], []>} : vector<32x32xf32>, vector<32x132xf32>, vector<32x132xf32> -> vector<32x132xf32>
    %82 = arith.addf %77, %81 : vector<32x132xf32>
    %c2_65 = arith.constant 2 : index
    %c0_66 = arith.constant 0 : index
    %c128 = arith.constant 128 : index
    %83 = vector.load %arg1[%c2_65, %c0_66, %c128] : memref<5x32x160xf32, #tpu.memory_space<vmem>>, vector<1x32x32xf32>
    %84 = vector.shape_cast %83 : vector<1x32x32xf32> to vector<32x32xf32>
    %85 = vector.extract_strided_slice %63 {offsets = [0, 4], sizes = [32, 132], strides = [1, 1]} : vector<32x136xf32> to vector<32x132xf32>
    %cst_67 = arith.constant dense<0.000000e+00> : vector<32x132xf32>
    %86 = tpu.matmul %84, %85, %cst_67 {dimension_numbers = #tpu.dot_dimension_numbers<[1], [0], [0], [1], [0, 0, 1, 1], [], []>} : vector<32x32xf32>, vector<32x132xf32>, vector<32x132xf32> -> vector<32x132xf32>
    %87 = arith.addf %82, %86 : vector<32x132xf32>
    %c2_68 = arith.constant 2 : index
    %c0_69 = arith.constant 0 : index
    %c0_70 = arith.constant 0 : index
    %88 = vector.load %arg3[%c2_68, %c0_69, %c0_70] : memref<5x32x1xf32, #tpu.memory_space<vmem>>, vector<1x32x1xf32>
    %89 = vector.shape_cast %88 : vector<1x32x1xf32> to vector<32x1xf32>
    %90 = vector.broadcast %89 : vector<32x1xf32> to vector<32x132xf32>
    %91 = arith.addf %87, %90 : vector<32x132xf32>
    %cst_71 = arith.constant 0.000000e+00 : f32
    %92 = vector.broadcast %cst_71 : f32 to vector<32x132xf32>
    %93 = arith.maximumf %91, %92 : vector<32x132xf32>
    %94 = vector.extract_strided_slice %93 {offsets = [0, 0], sizes = [32, 64], strides = [1, 1]} : vector<32x132xf32> to vector<32x64xf32>
    %c0_72 = arith.constant 0 : index
    %c1_73 = arith.constant 1 : index
    %95 = vector.load %arg5[%c0_72, %c1_73] : memref<32x132xf32, #tpu.memory_space<vmem>>, vector<32x64xf32>
    tpu.vector_store %arg5[%c0_72, %c1_73], %94 {strides = array<i32>} : memref<32x132xf32, #tpu.memory_space<vmem>>, vector<32x64xf32>,
    %96 = vector.extract_strided_slice %93 {offsets = [0, 68], sizes = [32, 64], strides = [1, 1]} : vector<32x132xf32> to vector<32x64xf32>
    %c0_74 = arith.constant 0 : index
    %c67 = arith.constant 67 : index
    %97 = vector.load %arg5[%c0_74, %c67] : memref<32x132xf32, #tpu.memory_space<vmem>>, vector<32x64xf32>
    tpu.vector_store %arg5[%c0_74, %c67], %96 {strides = array<i32>} : memref<32x132xf32, #tpu.memory_space<vmem>>, vector<32x64xf32>,
    %c3 = arith.constant 3 : index
    %c0_75 = arith.constant 0 : index
    %c0_76 = arith.constant 0 : index
    %98 = vector.load %arg1[%c3, %c0_75, %c0_76] : memref<5x32x160xf32, #tpu.memory_space<vmem>>, vector<1x16x32xf32>
    %99 = vector.shape_cast %98 : vector<1x16x32xf32> to vector<16x32xf32>
    %c0_77 = arith.constant 0 : index
    %c0_78 = arith.constant 0 : index
    %100 = vector.load %arg5[%c0_77, %c0_78] : memref<32x132xf32, #tpu.memory_space<vmem>>, vector<32x130xf32>
    %cst_79 = arith.constant dense<0.000000e+00> : vector<16x130xf32>
    %101 = tpu.matmul %99, %100, %cst_79 {dimension_numbers = #tpu.dot_dimension_numbers<[1], [0], [0], [1], [0, 0, 1, 1], [], []>} : vector<16x32xf32>, vector<32x130xf32>, vector<16x130xf32> -> vector<16x130xf32>
    %c3_80 = arith.constant 3 : index
    %c0_81 = arith.constant 0 : index
    %c32_82 = arith.constant 32 : index
    %102 = vector.load %arg1[%c3_80, %c0_81, %c32_82] : memref<5x32x160xf32, #tpu.memory_space<vmem>>, vector<1x16x32xf32>
    %103 = vector.shape_cast %102 : vector<1x16x32xf32> to vector<16x32xf32>
    %c0_83 = arith.constant 0 : index
    %c1_84 = arith.constant 1 : index
    %104 = vector.load %arg5[%c0_83, %c1_84] : memref<32x132xf32, #tpu.memory_space<vmem>>, vector<32x130xf32>
    %cst_85 = arith.constant dense<0.000000e+00> : vector<16x130xf32>
    %105 = tpu.matmul %103, %104, %cst_85 {dimension_numbers = #tpu.dot_dimension_numbers<[1], [0], [0], [1], [0, 0, 1, 1], [], []>} : vector<16x32xf32>, vector<32x130xf32>, vector<16x130xf32> -> vector<16x130xf32>
    %106 = arith.addf %101, %105 : vector<16x130xf32>
    %c3_86 = arith.constant 3 : index
    %c0_87 = arith.constant 0 : index
    %c64_88 = arith.constant 64 : index
    %107 = vector.load %arg1[%c3_86, %c0_87, %c64_88] : memref<5x32x160xf32, #tpu.memory_space<vmem>>, vector<1x16x32xf32>
    %108 = vector.shape_cast %107 : vector<1x16x32xf32> to vector<16x32xf32>
    %c0_89 = arith.constant 0 : index
    %c2_90 = arith.constant 2 : index
    %109 = vector.load %arg5[%c0_89, %c2_90] : memref<32x132xf32, #tpu.memory_space<vmem>>, vector<32x130xf32>
    %cst_91 = arith.constant dense<0.000000e+00> : vector<16x130xf32>
    %110 = tpu.matmul %108, %109, %cst_91 {dimension_numbers = #tpu.dot_dimension_numbers<[1], [0], [0], [1], [0, 0, 1, 1], [], []>} : vector<16x32xf32>, vector<32x130xf32>, vector<16x130xf32> -> vector<16x130xf32>
    %111 = arith.addf %106, %110 : vector<16x130xf32>
    %c3_92 = arith.constant 3 : index
    %c0_93 = arith.constant 0 : index
    %c0_94 = arith.constant 0 : index
    %112 = vector.load %arg3[%c3_92, %c0_93, %c0_94] : memref<5x32x1xf32, #tpu.memory_space<vmem>>, vector<1x16x1xf32>
    %113 = vector.shape_cast %112 : vector<1x16x1xf32> to vector<16x1xf32>
    %114 = vector.broadcast %113 : vector<16x1xf32> to vector<16x130xf32>
    %115 = arith.addf %111, %114 : vector<16x130xf32>
    %cst_95 = arith.constant 0.000000e+00 : f32
    %116 = vector.broadcast %cst_95 : f32 to vector<16x130xf32>
    %117 = arith.maximumf %115, %116 : vector<16x130xf32>
    %118 = vector.extract_strided_slice %117 {offsets = [0, 0], sizes = [16, 64], strides = [1, 1]} : vector<16x130xf32> to vector<16x64xf32>
    %c0_96 = arith.constant 0 : index
    %c1_97 = arith.constant 1 : index
    %119 = vector.load %arg6[%c0_96, %c1_97] : memref<16x132xf32, #tpu.memory_space<vmem>>, vector<16x64xf32>
    tpu.vector_store %arg6[%c0_96, %c1_97], %118 {strides = array<i32>} : memref<16x132xf32, #tpu.memory_space<vmem>>, vector<16x64xf32>,
    %120 = vector.extract_strided_slice %117 {offsets = [0, 66], sizes = [16, 64], strides = [1, 1]} : vector<16x130xf32> to vector<16x64xf32>
    %c0_98 = arith.constant 0 : index
    %c67_99 = arith.constant 67 : index
    %121 = vector.load %arg6[%c0_98, %c67_99] : memref<16x132xf32, #tpu.memory_space<vmem>>, vector<16x64xf32>
    tpu.vector_store %arg6[%c0_98, %c67_99], %120 {strides = array<i32>} : memref<16x132xf32, #tpu.memory_space<vmem>>, vector<16x64xf32>,
    %c4_100 = arith.constant 4 : index
    %c0_101 = arith.constant 0 : index
    %c0_102 = arith.constant 0 : index
    %122 = vector.load %arg1[%c4_100, %c0_101, %c0_102] : memref<5x32x160xf32, #tpu.memory_space<vmem>>, vector<1x1x16xf32>
    %123 = vector.shape_cast %122 : vector<1x1x16xf32> to vector<1x16xf32>
    %c0_103 = arith.constant 0 : index
    %c0_104 = arith.constant 0 : index
    %124 = vector.load %arg6[%c0_103, %c0_104] : memref<16x132xf32, #tpu.memory_space<vmem>>, vector<16x130xf32>
    %cst_105 = arith.constant dense<0.000000e+00> : vector<1x130xf32>
    %125 = tpu.matmul %123, %124, %cst_105 {dimension_numbers = #tpu.dot_dimension_numbers<[1], [0], [0], [1], [0, 0, 1, 1], [], []>} : vector<1x16xf32>, vector<16x130xf32>, vector<1x130xf32> -> vector<1x130xf32>
    %c4_106 = arith.constant 4 : index
    %c0_107 = arith.constant 0 : index
    %c16_108 = arith.constant 16 : index
    %126 = vector.load %arg1[%c4_106, %c0_107, %c16_108] : memref<5x32x160xf32, #tpu.memory_space<vmem>>, vector<1x1x16xf32>
    %127 = vector.shape_cast %126 : vector<1x1x16xf32> to vector<1x16xf32>
    %c0_109 = arith.constant 0 : index
    %c1_110 = arith.constant 1 : index
    %128 = vector.load %arg6[%c0_109, %c1_110] : memref<16x132xf32, #tpu.memory_space<vmem>>, vector<16x130xf32>
    %cst_111 = arith.constant dense<0.000000e+00> : vector<1x130xf32>
    %129 = tpu.matmul %127, %128, %cst_111 {dimension_numbers = #tpu.dot_dimension_numbers<[1], [0], [0], [1], [0, 0, 1, 1], [], []>} : vector<1x16xf32>, vector<16x130xf32>, vector<1x130xf32> -> vector<1x130xf32>
    %130 = arith.addf %125, %129 : vector<1x130xf32>
    %c4_112 = arith.constant 4 : index
    %c0_113 = arith.constant 0 : index
    %c32_114 = arith.constant 32 : index
    %131 = vector.load %arg1[%c4_112, %c0_113, %c32_114] : memref<5x32x160xf32, #tpu.memory_space<vmem>>, vector<1x1x16xf32>
    %132 = vector.shape_cast %131 : vector<1x1x16xf32> to vector<1x16xf32>
    %c0_115 = arith.constant 0 : index
    %c2_116 = arith.constant 2 : index
    %133 = vector.load %arg6[%c0_115, %c2_116] : memref<16x132xf32, #tpu.memory_space<vmem>>, vector<16x130xf32>
    %cst_117 = arith.constant dense<0.000000e+00> : vector<1x130xf32>
    %134 = tpu.matmul %132, %133, %cst_117 {dimension_numbers = #tpu.dot_dimension_numbers<[1], [0], [0], [1], [0, 0, 1, 1], [], []>} : vector<1x16xf32>, vector<16x130xf32>, vector<1x130xf32> -> vector<1x130xf32>
    %135 = arith.addf %130, %134 : vector<1x130xf32>
    %c4_118 = arith.constant 4 : index
    %c0_119 = arith.constant 0 : index
    %c0_120 = arith.constant 0 : index
    %136 = vector.load %arg3[%c4_118, %c0_119, %c0_120] : memref<5x32x1xf32, #tpu.memory_space<vmem>>, vector<1x1x1xf32>
    %137 = vector.shape_cast %136 : vector<1x1x1xf32> to vector<1x1xf32>
    %138 = vector.broadcast %137 : vector<1x1xf32> to vector<1x130xf32>
    %139 = arith.addf %135, %138 : vector<1x130xf32>
    %140 = vector.extract_strided_slice %139 {offsets = [0, 0], sizes = [1, 64], strides = [1, 1]} : vector<1x130xf32> to vector<1x64xf32>
    %c0_121 = arith.constant 0 : index
    %c0_122 = arith.constant 0 : index
    %141 = vector.load %arg4[%c0_121, %c0_122] : memref<1x128xf32, #tpu.memory_space<vmem>>, vector<1x64xf32>
    tpu.vector_store %arg4[%c0_121, %c0_122], %140 {strides = array<i32>} : memref<1x128xf32, #tpu.memory_space<vmem>>, vector<1x64xf32>,
    %142 = vector.extract_strided_slice %139 {offsets = [0, 66], sizes = [1, 64], strides = [1, 1]} : vector<1x130xf32> to vector<1x64xf32>
    %c0_123 = arith.constant 0 : index
    %c64_124 = arith.constant 64 : index
    %143 = vector.load %arg4[%c0_123, %c64_124] : memref<1x128xf32, #tpu.memory_space<vmem>>, vector<1x64xf32>
    tpu.vector_store %arg4[%c0_123, %c64_124], %142 {strides = array<i32>} : memref<1x128xf32, #tpu.memory_space<vmem>>, vector<1x64xf32>,
    return
  }
}

</mosaic_0001>

<bundles_post_ra>
// kernel: decoder_forward.1
= control target key start
LH: loop header
LB: loop body
LE: loop exit
PB: predicated region body
PF: predicated region fallthrough
CT: control target
= control target key end

     0   :  { %v3244_v0 = vmov 0.0|0.0   ;;  %vm3245_vm0 = vmmov 0   ;;  %v3246_v3 = vmov 0.0   ;;  %s3247_s21 = smov 124   ;;  %vm33_vm1 = vcmask 130048   ;;  %s3249_s24 = smov 127   ;;  %s3786_s2 = inlined_call_operand.vmem [shape: f32[3,68,136], index: 2, kind: input, shape index: {}]   ;;  %s3787_s1 = inlined_call_operand.vmem [shape: f32[5,32,160], index: 1, kind: input, shape index: {}]   ;;  %s3788_s0 = inlined_call_operand.vmem [shape: f32[4,16], index: 0, kind: input, shape index: {}]   ;;  %s3789_s3 = inlined_call_operand.vmem [shape: f32[5,32,1], index: 3, kind: input, shape index: {}]   ;;  %s3790_s4 = inlined_call_operand.vmem [shape: f32[1,128], index: 4, kind: output, shape index: {}]  }
   0x1   :  { %2879 = vmatprep.subr.bf16.mxu0 %v3244_v0  ;;  %v31_v1 = vld [vmem:[%s3786_s2] sm:$0xff]  ;;  %v32_v2 = vld [vmem:[%s3786_s2 + $0x10] sm:$0xff]  ;;  %2798 = vmatprep.mubr.msk.f32.mxu0 %vm3245_vm0, %v3246_v3  ;;  %17 = vst [vmem:[#allocation2] sm:$0xff] %v3246_v3  ;;  %20 = vst [vmem:[#allocation2 + $0x10] sm:$0xff] %v3246_v3  ;;  %vm18_vm2 = vcmask 31744   ;;  %s3250_s27 = smov 120  }
   0x2   :  { %22 = vst [vmem:[#allocation2 + $0x20] sm:$0xff] %v3246_v3  ;;  %24 = vst [vmem:[#allocation2 + $0x30] sm:$0xff] %v3246_v3  ;;  %v2880_v4 = vpack.c.bf16 %v32_v2, %v31_v1  ;;  %v108_v5 = vld [vmem:[%s3787_s1 + $0x10] sm:$0xff]  ;;  %v30_v6 = vld [vmem:[%s3788_s0] sm:$0xf]  ;;  %s3248_s0 = smov 126  }
   0x3   :  { %26 = vst [vmem:[#allocation3] sm:$0xff] %v3246_v3  ;;  %28 = vst [vmem:[#allocation3 + $0x10] sm:$0xff] %v3246_v3  ;;  %113 = vrot.lane.b32.xlu1 %v108_v5, %s3247_s21  ;;  %v107_v9 = vld [vmem:[%s3787_s1] sm:$0xff]  ;;  %v2638_v10 = vld [vmem:[%s3786_s2 + $0x90] sm:$0xff]  ;;  %v3251_v12 = vmov 0   ;;  %vm122_vm3 = vcmask 1043456  }
   0x4   :  { %2881 = vmatpush3.bf16.msra.mxu0 %v2880_v4  ;;  %19 = vst.msk [vmem:[#allocation2 + $0x8] sm:$0xff] %vm18_vm2, %v3246_v3  ;;  %21 = vst.msk [vmem:[#allocation2 + $0x18] sm:$0xff] %vm18_vm2, %v3246_v3  ;;  %v2639_v11 = vld [vmem:[%s3786_s2 + $0xa0] sm:$0xff]  ;;  %3082 = vset.pattern.permute.xlu1 %v3251_v12  ;;  %v371_v13 = vld [vmem:[%s3789_s3 + $0x8] sm:$0xff]  ;;  %vm399_vm4 = vcmask 1041408   ;;  %s3252_s18 = smov 112  }
   0x5   :  { %23 = vst.msk [vmem:[#allocation2 + $0x28] sm:$0xff] %vm18_vm2, %v3246_v3  ;;  %25 = vst.msk [vmem:[#allocation2 + $0x38] sm:$0xff] %vm18_vm2, %v3246_v3  ;;  %3081 = vset.pattern.permute.xlu0 %v3251_v12  ;;  %v370_v14 = vld [vmem:[%s3789_s3] sm:$0xff]  ;;  %v2882_v15 = vpack.c.bf16 %v2639_v11, %v2638_v10  ;;  %v2640_v22 = vld [vmem:[%s3786_s2 + $0xb0] sm:$0xff]  ;;  %vm392_vm5 = vcmask 277504   ;;  %s3253_s25 = smov 96  }
   0x6   :  { %27 = vst.msk [vmem:[#allocation3 + $0x8] sm:$0xff] %vm18_vm2, %v3246_v3  ;;  %29 = vst.msk [vmem:[#allocation3 + $0x18] sm:$0xff] %vm18_vm2, %v3246_v3  ;;  %v2641_v23 = vld [vmem:[%s3786_s2 + $0xc0] sm:$0xff]  ;;  %v2642_v25 = vld [vmem:[%s3786_s2 + $0xd0] sm:$0x3]  ;;  %s3254_s28 = smov 80  }
   0x7   :  { %2799 = vmatmul.mubr.msk.f32.vlgmr.msra.gmra.mrb[0].mxu0 %vm33_vm1, %v30_v6  ;;  %2883 = vmatprep.subr.bf16.mxu0 %v2882_v15  ;;  %v2886_v24 = vpack.c.bf16 %v2641_v23, %v2640_v22  ;;  %v3359_v26 = vld [vmem:[%s3787_s1 + $0x40] sm:$0xff]  ;;  %v3379_v41 = vld [vmem:[%s3787_s1 + $0x50] sm:$0xff]  ;;  %s3255_s29 = smov 125   ;;  %s3256_s30 = smov 64   ;;  %v2671_v43 = vld [vmem:[%s3789_s3 + $0x28] sm:$0xff]  ;;  %vm1074_vm6 = vcmask 556032  }
   0x8   :  { %2885 = vmatpush3.bf16.msra.mxu0 %v2882_v15  ;;  %v3366_v27 = vld [vmem:[%s3787_s1 + $0x60] sm:$0xff]  ;;  %v3388_v42 = vld [vmem:[%s3787_s1 + $0x70] sm:$0xff]  ;;  %v2673_v44 = vld [vmem:[%s3789_s3 + $0x38] sm:$0xff]  ;;  %vm1236_vm7 = vcmask 261120   ;;  %s3257_s14 = smov 32   ;;  %vm1455_vm8 = vcmask 1031168  }
   0x9   :  { %2887 = vmatprep.subr.bf16.mxu0 %v2886_v24  ;;  %v2670_v45 = vld [vmem:[%s3789_s3 + $0x20] sm:$0xff]  ;;  %v2672_v46 = vld [vmem:[%s3789_s3 + $0x30] sm:$0xff]  ;;  %v2675_v47 = vld [vmem:[%s3786_s2 + $0x128] sm:$0xff]  ;;  %vm1597_vm9 = vcmask 1022976   ;;  %vm1223_vm10 = vcmask 1039360   ;;  %vm1735_vm11 = vcmask 1014784  }
   0xa   :  { %v2677_v48 = vld [vmem:[%s3786_s2 + $0x138] sm:$0xff]  ;;  %v2674_v49 = vld [vmem:[%s3786_s2 + $0x120] sm:$0xff]  ;;  %v2676_v51 = vld [vmem:[%s3786_s2 + $0x130] sm:$0xff]  ;;  %vm1914_vm12 = vcmask 531464   ;;  %vm1953_vm13 = vcmask 23552   ;;  %vm1951_vm14 = vcmask 1048088  }
   0xb   :  { %v2910_v50 = vpack.c.bf16 %v2677_v48, %v2675_v47  ;;  %v2679_v52 = vld [vmem:[%s3786_s2 + $0x148] sm:$0xff]  ;;  %v2681_v53 = vld [vmem:[%s3786_s2 + $0x158] sm:$0xff]  ;;  %v2912_v54 = vpack.c.bf16 %v2676_v51, %v2674_v49  ;;  %v2678_v56 = vld [vmem:[%s3786_s2 + $0x140] sm:$0xff]  ;;  %vm2330_vm15 = vcmask 7168   ;;  %vm2612_vm0 = vcmask 516096  }
   0xc   :  { %2889 = vmatpush3.bf16.msra.mxu0 %v2886_v24  ;;  %v2914_v55 = vpack.c.bf16 %v2681_v53, %v2679_v52  ;;  %v2680_v57 = vld [vmem:[%s3786_s2 + $0x150] sm:$0xff]  ;;  %v2683_v58 = vld [vmem:[%s3786_s2 + $0x168] sm:$0xff]  ;;  %v2685_v59 = vld [vmem:[%s3786_s2 + $0x178] sm:$0xff] }
   0xd   :  { %2824 = vmatprep.subr.msk.mxu0 %vm399_vm4, %v2642_v25  ;;  %v2916_v60 = vpack.c.bf16 %v2680_v57, %v2678_v56  ;;  %v2918_v61 = vpack.c.bf16 %v2685_v59, %v2683_v58  ;;  %v2682_v62 = vld [vmem:[%s3786_s2 + $0x160] sm:$0xff]  ;;  %v2684_v63 = vld [vmem:[%s3786_s2 + $0x170] sm:$0xff] }
   0xe   :  { %v2920_v0 = vpack.c.bf16 %v2684_v63, %v2682_v62  ;;  %v2699_v58 = vld [vmem:[%s3787_s1 + $0x90] sm:$0xff] }
  0x10   :  { %2825 = vmatpush3.msk.msra.mxu0 %vm399_vm4, %v2642_v25 }
  0x11   :  { %2911 = vmatprep.subr.bf16.mxu0 %v2910_v50 }
  0x75   :  { %v114_v17 = vpop.permute.xlu1 %113 }
  0xda   :  { %v103_v7 = vpop.f32.mrb[0].mxu0 }
  0xdb   :  { %285 = vrot.lane.b32.xlu1 %v103_v7, %s3248_s0  ;;  %116 = vrot.lane.b32.xlu0 %v103_v7, %s3249_s24  ;;  %v2800_v8 = vpop.f32.mrb[1].mxu0 }
  0xdf   :  { %111 = vrot.lane.b32.xlu0 %v107_v9, %s3247_s21  ;;  %283 = vrot.lane.b32.xlu1 %v108_v5, %s3250_s27 }
  0xe3   :  { %281 = vrot.lane.b32.xlu0 %v107_v9, %s3250_s27  ;;  %379 = vperm.xlu1 %3082, %v371_v13  }
  0xe7   :  { %374 = vperm.xlu0 %3081, %v370_v14  }
  0xeb   :  { %487 = vrot.lane.b32.xlu0 %v3359_v26, %s3252_s18 }
  0xef   :  { %491 = vrot.lane.b32.xlu0 %v3366_v27, %s3252_s18 }
 0x14d   :  { %v117_v16 = vpop.permute.xlu0 %116  ;;  %v286_v19 = vpop.permute.xlu1 %285 }
 0x14e   :  { %2801 = vmatprep.subr.msk.mxu1 %vm122_vm3, %v117_v16 }
 0x14f   :  { %2802 = vmatpush3.msk.msra.mxu1 %vm122_vm3, %v117_v16 }
 0x150   :  { %2806 = vmatprep.subr.msk.mxu1 %vm122_vm3, %v103_v7 }
 0x151   :  { %v112_v18 = vpop.permute.xlu0 %111  ;;  %v284_v21 = vpop.permute.xlu1 %283 }
 0x152   :  { %2803 = vmatprep.mubr.msk.f32.mxu1 %vm18_vm2, %v112_v18 }
 0x153   :  { %2804 = vmatmul.mubr.msk.f32.vlgmr.msra.gmra.mrb[0].mxu1 %vm18_vm2, %v114_v17 }
 0x154   :  { %2807 = vmatpush3.msk.msra.mxu1 %vm122_vm3, %v103_v7  ;;  %2808 = vmatprep.mubr.msk.f32.mxu1 %vm18_vm2, %v107_v9 }
 0x155   :  { %2811 = vmatprep.subr.msk.mxu1 %vm122_vm3, %v286_v19  ;;  %v282_v20 = vpop.permute.xlu0 %281 }
 0x15b   :  { %2809 = vmatmul.mubr.msk.f32.vlgmr.msra.gmra.mrb[0].mxu1 %vm18_vm2, %v108_v5 }
 0x15c   :  { %2812 = vmatpush3.msk.msra.mxu1 %vm122_vm3, %v286_v19  ;;  %2813 = vmatprep.mubr.msk.f32.mxu1 %vm18_vm2, %v282_v20 }
 0x162   :  { %v380_v28 = vpop.permute.xlu1 %379 }
 0x163   :  { %2814 = vmatmul.mubr.msk.f32.vlgmr.msra.gmra.mrb[0].mxu1 %vm18_vm2, %v284_v21  ;;  %vm2622_vm2 = vcmask 1040896  }
 0x166   :  { %v375_v29 = vpop.permute.xlu0 %374 }
 0x16a   :  { %v488_v36 = vpop.permute.xlu0 %487 }
 0x16b   :  { %2833 = vmatprep.mubr.msk.f32.mxu1 %vm33_vm1, %v488_v36  ;;  %v2686_v36 = vld [vmem:[%s3786_s2 + $0x180] sm:$0xff] }
 0x16e   :  { %v492_v1 = vpop.permute.xlu0 %491 }
 0x236   :  { %v2815_v30 = vpop.f32.mrb[0].mxu1 }
 0x237   :  { %v383_v31 = vadd.f32 %v2815_v30, %v380_v28  ;;  %v359_v32 = vpop.f32.mrb[1].mxu1 }
 0x238   :  { %v382_v33 = vadd.f32 %v375_v29, %v359_v32 }
 0x239   :  { %v385_v35 = vmax.f32 %v383_v31, 0.0 }
 0x23a   :  { %v384_v34 = vmax.f32 %v382_v33, 0.0  ;;  %v2687_v33 = vld [vmem:[%s3786_s2 + $0x188] sm:$0xff] }
 0x23c   :  { %2826 = vmatprep.mubr.msk.f32.mxu0 %vm392_vm5, %v384_v34  ;;  %v2689_v34 = vld [vmem:[%s3786_s2 + $0x198] sm:$0xff] }
 0x23d   :  { %2827 = vmatmul.mubr.msk.f32.vlgmr.msra.gmra.mrb[2].mxu0 %vm392_vm5, %v385_v35  ;;  %v2922_v35 = vpack.c.bf16 %v2689_v34, %v2687_v33 }
 0x23e   :  { %1157 = vmatprep.mubr.f32.mxu0 %v3246_v3  ;;  %2913 = vmatpush1.bf16.msra.mxu0 %v2912_v54 }
 0x23f   :  { %2915 = vmatprep.subr.bf16.mxu0 %v2914_v55 }
 0x242   :  { %2917 = vmatpush1.bf16.msra.mxu0 %v2916_v60 }
 0x243   :  { %2919 = vmatprep.subr.bf16.mxu0 %v2918_v61 }
 0x246   :  { %2921 = vmatpush1.bf16.msra.mxu0 %v2920_v0 }
 0x247   :  { %2923 = vmatprep.subr.bf16.mxu0 %v2922_v35 }
 0x310   :  { %v2828_v37 = vpop.f32.mrb[2].mxu0 }
 0x311   :  { %v469_v38 = vpop.f32.mrb[3].mxu0 }
 0x312   :  { %v3088_v39 = vpack.i.bf16 %v2828_v37, %v469_v38  ;;  %v3372_v40 = vpack.c.bf16 %v2828_v37, %v469_v38  ;;  %v2688_v37 = vld [vmem:[%s3786_s2 + $0x190] sm:$0xff] }
 0x313   :  { %v2924_v38 = vpack.c.bf16 %v2688_v37, %v2686_v36 }
 0x314   :  { %3089 = vrot.lane.b32.xlu0 %v3088_v39, %s3248_s0  ;;  %3084 = vrot.lane.b32.xlu1 %v3088_v39, %s3249_s24 }
 0x315   :  { %2925 = vmatpush1.bf16.msra.mxu0 %v2924_v38 }
 0x318   :  { %691 = vrot.lane.b32.xlu0 %v3379_v41, %s3253_s25  ;;  %489 = vrot.lane.b32.xlu1 %v3379_v41, %s3252_s18 }
 0x31c   :  { %693 = vrot.lane.b32.xlu0 %v3366_v27, %s3253_s25  ;;  %493 = vrot.lane.b32.xlu1 %v3388_v42, %s3252_s18 }
 0x320   :  { %800 = vrot.lane.b32.xlu0 %v3359_v26, %s3254_s28  ;;  %689 = vrot.lane.b32.xlu1 %v3359_v26, %s3253_s25 }
 0x324   :  { %3099 = vrot.lane.b32.xlu0 %v3088_v39, %s3247_s21  ;;  %3094 = vrot.lane.b32.xlu1 %v3088_v39, %s3255_s29  ;;  %v2691_v39 = vld [vmem:[%s3786_s2 + $0x1a8] sm:$0xf] }
 0x325   :  { %2692 = vmatprep.subr.msk.mxu0 %vm122_vm3, %v2691_v39 }
 0x328   :  { %806 = vrot.lane.b32.xlu0 %v3388_v42, %s3254_s28  ;;  %695 = vrot.lane.b32.xlu1 %v3388_v42, %s3253_s25 }
 0x32c   :  { %913 = vrot.lane.b32.xlu0 %v3379_v41, %s3256_s30  ;;  %802 = vrot.lane.b32.xlu1 %v3379_v41, %s3254_s28 }
 0x330   :  { %917 = vrot.lane.b32.xlu0 %v3388_v42, %s3256_s30  ;;  %804 = vrot.lane.b32.xlu1 %v3366_v27, %s3254_s28 }
 0x334   :  { %1034 = vperm.xlu0 %3081, %v2671_v43   ;;  %911 = vrot.lane.b32.xlu1 %v3359_v26, %s3256_s30 }
 0x338   :  { %1044 = vperm.xlu0 %3081, %v2673_v44   ;;  %915 = vrot.lane.b32.xlu1 %v3366_v27, %s3256_s30 }
 0x33c   :  { %1029 = vperm.xlu1 %3082, %v2670_v45   ;;  %1433 = vrot.lane.b32.xlu0 %v2699_v58, %s3256_s30 }
 0x340   :  { %1039 = vperm.xlu1 %3082, %v2672_v46  }
 0x386   :  { %v3090_v2 = vpop.permute.xlu0 %3089  ;;  %v3085_v4 = vpop.permute.xlu1 %3084 }
 0x387   :  { %v3087_v5 = vunpack.i.h.bf16 %v3085_v4  ;;  %v3086_v6 = vunpack.i.l.bf16 %v3085_v4  ;;  %v3092_v10 = vunpack.i.h.bf16 %v3090_v2  ;;  %v3091_v11 = vunpack.i.l.bf16 %v3090_v2 }
 0x389   :  { %v2890_v7 = vpack.c.bf16 %v3087_v5, %v3086_v6  ;;  %v2898_v14 = vpack.c.bf16 %v3092_v10, %v3091_v11 }
 0x38a   :  { %v692_v8 = vpop.permute.xlu0 %691  ;;  %v490_v9 = vpop.permute.xlu1 %489 }
 0x38b   :  { %2891 = vmatprep.subr.bf16.mxu1 %v2890_v7 }
 0x38c   :  { %2893 = vmatpush3.bf16.msra.mxu1 %v2890_v7 }
 0x38d   :  { %2895 = vmatprep.subr.bf16.mxu1 %v3372_v40 }
 0x38e   :  { %v694_v12 = vpop.permute.xlu0 %693  ;;  %v494_v13 = vpop.permute.xlu1 %493 }
 0x38f   :  { %2834 = vmatmul.mubr.msk.f32.vlgmr.msra.gmra.mrb[2].mxu1 %vm33_vm1, %v490_v9  ;;  %v2700_v9 = vld [vmem:[%s3787_s1 + $0xa0] sm:$0xff] }
 0x390   :  { %2897 = vmatpush3.bf16.msra.mxu1 %v3372_v40  ;;  %2836 = vmatprep.mubr.msk.f32.mxu1 %vm33_vm1, %v492_v1  ;;  %v2690_v40 = vld [vmem:[%s3786_s2 + $0x1a0] sm:$0xf]  ;;  %s3258_s2 = smov 1  }
 0x391   :  { %2899 = vmatprep.subr.bf16.mxu1 %v2898_v14  ;;  %2693 = vmatpush1.msk.msra.mxu0 %vm122_vm3, %v2690_v40 }
 0x392   :  { %v801_v15 = vpop.permute.xlu0 %800  ;;  %v690_v16 = vpop.permute.xlu1 %689 }
 0x393   :  { %2837 = vmatmul.mubr.msk.f32.gmra.mrb[4].mxu1 %vm33_vm1, %v494_v13  ;;  %v2701_v13 = vld [vmem:[%s3787_s1 + $0xb0] sm:$0xff] }
 0x394   :  { %2843 = vmatprep.mubr.msk.f32.mxu1 %vm33_vm1, %v3359_v26 }
 0x396   :  { %v3095_v17 = vpop.permute.xlu1 %3094  ;;  %v3100_v20 = vpop.permute.xlu0 %3099 }
 0x397   :  { %v3097_v18 = vunpack.i.h.bf16 %v3095_v17  ;;  %v3096_v19 = vunpack.i.l.bf16 %v3095_v17  ;;  %2844 = vmatmul.mubr.msk.f32.vlgmr.msra.gmra.mrb[2].mxu1 %vm33_vm1, %v3379_v41  ;;  %v3102_v23 = vunpack.i.h.bf16 %v3100_v20  ;;  %v3101_v24 = vunpack.i.l.bf16 %v3100_v20  ;;  %v3509_v41 = vld [vmem:[%s3787_s1 + $0x80] sm:$0xff]  ;;  %v2729_v17 = vld [vmem:[%s3789_s3 + $0x58] sm:$0xff] }
 0x398   :  { %2901 = vmatpush3.bf16.msra.mxu1 %v2898_v14  ;;  %2846 = vmatprep.mubr.msk.f32.mxu1 %vm33_vm1, %v3366_v27  ;;  %v2726_v14 = vld [vmem:[%s3789_s3 + $0x40] sm:$0xff] }
 0x399   :  { %v2902_v21 = vpack.c.bf16 %v3097_v18, %v3096_v19  ;;  %v2906_v26 = vpack.c.bf16 %v3102_v23, %v3101_v24  ;;  %1431 = vrot.lane.b32.xlu1 %v3509_v41, %s3256_s30 }
 0x39a   :  { %v696_v22 = vpop.permute.xlu1 %695  ;;  %v807_v27 = vpop.permute.xlu0 %806 }
 0x39b   :  { %2847 = vmatmul.mubr.msk.f32.gmra.mrb[4].mxu1 %vm33_vm1, %v3388_v42  ;;  %2903 = vmatprep.subr.bf16.mxu1 %v2902_v21 }
 0x39c   :  { %2853 = vmatprep.mubr.msk.f32.mxu1 %vm33_vm1, %v690_v16  ;;  %v2727_v16 = vld [vmem:[%s3789_s3 + $0x48] sm:$0xff] }
 0x39e   :  { %v803_v25 = vpop.permute.xlu1 %802  ;;  %v914_v30 = vpop.permute.xlu0 %913 }
 0x39f   :  { %2854 = vmatmul.mubr.msk.f32.vlgmr.msra.gmra.mrb[2].mxu1 %vm33_vm1, %v692_v8 }
 0x3a0   :  { %2905 = vmatpush3.bf16.msra.mxu1 %v2902_v21  ;;  %2856 = vmatprep.mubr.msk.f32.mxu1 %vm33_vm1, %v694_v12 }
 0x3a1   :  { %2907 = vmatprep.subr.bf16.mxu1 %v2906_v26 }
 0x3a2   :  { %v805_v28 = vpop.permute.xlu1 %804  ;;  %v918_v32 = vpop.permute.xlu0 %917 }
 0x3a3   :  { %2857 = vmatmul.mubr.msk.f32.gmra.mrb[4].mxu1 %vm33_vm1, %v696_v22 }
 0x3a4   :  { %2863 = vmatprep.mubr.msk.f32.mxu1 %vm33_vm1, %v801_v15  ;;  %v2728_v15 = vld [vmem:[%s3789_s3 + $0x50] sm:$0xff] }
 0x3a6   :  { %v912_v29 = vpop.permute.xlu1 %911 }
 0x3a7   :  { %2864 = vmatmul.mubr.msk.f32.vlgmr.msra.gmra.mrb[2].mxu1 %vm33_vm1, %v803_v25 }
 0x3a8   :  { %2909 = vmatpush3.bf16.msra.mxu1 %v2906_v26  ;;  %2866 = vmatprep.mubr.msk.f32.mxu1 %vm33_vm1, %v805_v28 }
 0x3aa   :  { %v916_v31 = vpop.permute.xlu1 %915 }
 0x3ab   :  { %2867 = vmatmul.mubr.msk.f32.gmra.mrb[4].mxu1 %vm33_vm1, %v807_v27 }
 0x3ac   :  { %2873 = vmatprep.mubr.msk.f32.mxu1 %vm33_vm1, %v912_v29 }
 0x3af   :  { %2874 = vmatmul.mubr.msk.f32.vlgmr.msra.gmra.mrb[2].mxu1 %vm33_vm1, %v914_v30 }
 0x3b0   :  { %2876 = vmatprep.mubr.msk.f32.mxu1 %vm33_vm1, %v916_v31 }
 0x3b3   :  { %2877 = vmatmul.mubr.msk.f32.gmra.mrb[4].mxu1 %vm33_vm1, %v918_v32  ;;  %v1035_v46 = vpop.permute.xlu0 %1034 }
 0x3b4   :  { %1309 = vmatprep.mubr.f32.mxu1 %v3246_v3 }
 0x3b7   :  { %v1045_v54 = vpop.permute.xlu0 %1044 }
 0x3bb   :  { %v1030_v43 = vpop.permute.xlu1 %1029  ;;  %v1434_v19 = vpop.permute.xlu0 %1433 }
 0x3bf   :  { %v1040_v51 = vpop.permute.xlu1 %1039 }
 0x40b   :  { %v1432_v18 = vpop.permute.xlu1 %1431 }
 0x482   :  { %v2875_v42 = vpop.f32.mrb[2].mxu1 }
 0x483   :  { %v999_v44 = vpop.f32.mrb[3].mxu1  ;;  %v1048_v47 = vadd.f32 %v2875_v42, %v1035_v46 }
 0x484   :  { %v1047_v45 = vadd.f32 %v1030_v43, %v999_v44 }
 0x485   :  { %v1052_v52 = vmax.f32 %v1048_v47, 0.0 }
 0x486   :  { %v1051_v48 = vmax.f32 %v1047_v45, 0.0  ;;  %v2878_v49 = vpop.f32.mrb[4].mxu1 }
 0x487   :  { %v1009_v50 = vpop.f32.mrb[5].mxu1  ;;  %v1050_v55 = vadd.f32 %v2878_v49, %v1045_v54 }
 0x488   :  { %2694 = vmatmul.mubr.msk.f32.vlgmr.msra.gmra.mrb[4].mxu0 %vm1074_vm6, %v1051_v48  ;;  %v1049_v53 = vadd.f32 %v1040_v51, %v1009_v50 }
 0x489   :  { %1163 = vmatprep.mubr.f32.mxu0 %v3246_v3  ;;  %v1054_v57 = vmax.f32 %v1050_v55, 0.0 }
 0x48a   :  { %v1053_v56 = vmax.f32 %v1049_v53, 0.0 }
 0x48c   :  { %2695 = vmatmul.mubr.msk.f32.gmra.mrb[6].mxu0 %vm1074_vm6, %v1052_v52 }
 0x48d   :  { %1169 = vmatprep.mubr.f32.mxu0 %v3246_v3 }
 0x490   :  { %2696 = vmatmul.mubr.msk.f32.gmra.mrb[8].mxu0 %vm1074_vm6, %v1053_v56 }
 0x491   :  { %1175 = vmatprep.mubr.f32.mxu0 %v3246_v3 }
 0x494   :  { %2697 = vmatmul.mubr.msk.f32.gmra.mrb[10].mxu0 %vm1074_vm6, %v1054_v57 }
 0x495   :  { %1406 = vmatprep.mubr.f32.mxu0 %v3246_v3 }
 0x55b   :  { %v1159_v59 = vpop.f32.mrb[4].mxu0 }
 0x55c   :  { %v1161_v60 = vpop.f32.mrb[5].mxu0 }
 0x55d   :  { %v3103_v61 = vpack.i.bf16 %v1161_v60, %v1159_v59 }
 0x55f   :  { %3104 = vrot.lane.b32.xlu1 %v3103_v61, %s3248_s0  ;;  %v1165_v62 = vpop.f32.mrb[6].mxu0 }
 0x560   :  { %v1167_v63 = vpop.f32.mrb[7].mxu0  ;;  %v2936_v0 = vpack.c.bf16 %v1165_v62, %v1159_v59 }
 0x561   :  { %v3113_v1 = vpack.i.bf16 %v1167_v63, %v1165_v62  ;;  %v2934_v2 = vpack.c.bf16 %v1167_v63, %v1161_v60 }
 0x563   :  { %3109 = vrot.lane.b32.xlu1 %v3103_v61, %s3255_s29  ;;  %3114 = vrot.lane.b32.xlu0 %v3113_v1, %s3248_s0  ;;  %v1171_v4 = vpop.f32.mrb[8].mxu0 }
 0x564   :  { %2935 = vmatprep.subr.bf16.mxu0 %v2934_v2  ;;  %v1173_v5 = vpop.f32.mrb[9].mxu0 }
 0x565   :  { %2937 = vmatpush1.bf16.msra.mxu0 %v2936_v0  ;;  %v3118_v6 = vpack.i.bf16 %v1173_v5, %v1171_v4 }
 0x567   :  { %3119 = vrot.lane.b32.xlu1 %v3118_v6, %s3248_s0  ;;  %v1177_v7 = vpop.f32.mrb[10].mxu0 }
 0x568   :  { %v1179_v8 = vpop.f32.mrb[11].mxu0  ;;  %v2940_v10 = vpack.c.bf16 %v1177_v7, %v1171_v4 }
 0x569   :  { %v3123_v11 = vpack.i.bf16 %v1179_v8, %v1177_v7  ;;  %v2938_v12 = vpack.c.bf16 %v1179_v8, %v1173_v5 }
 0x56b   :  { %1435 = vrot.lane.b32.xlu1 %v2700_v9, %s3256_s30  ;;  %3124 = vrot.lane.b32.xlu0 %v3123_v11, %s3248_s0 }
 0x56c   :  { %2939 = vmatprep.subr.bf16.mxu0 %v2938_v12 }
 0x56d   :  { %2941 = vmatpush1.bf16.msra.mxu0 %v2940_v10 }
 0x56f   :  { %1573 = vrot.lane.b32.xlu1 %v3509_v41, %s3257_s14  ;;  %3129 = vrot.lane.b32.xlu0 %v3113_v1, %s3255_s29 }
 0x570   :  { %2706 = vmatmul.mubr.msk.f32.vlgmr.msra.gmra.mrb[12].mxu0 %vm1236_vm7, %v3509_v41 }
 0x571   :  { %1412 = vmatprep.mubr.f32.mxu0 %v3246_v3 }
 0x573   :  { %3139 = vrot.lane.b32.xlu1 %v3103_v61, %s3249_s24  ;;  %3134 = vrot.lane.b32.xlu0 %v3118_v6, %s3255_s29 }
 0x574   :  { %2707 = vmatmul.mubr.msk.f32.gmra.mrb[14].mxu0 %vm1236_vm7, %v2699_v58 }
 0x575   :  { %1418 = vmatprep.mubr.f32.mxu0 %v3246_v3 }
 0x577   :  { %3149 = vrot.lane.b32.xlu1 %v3123_v11, %s3255_s29  ;;  %1437 = vrot.lane.b32.xlu0 %v2701_v13, %s3256_s30 }
 0x578   :  { %2708 = vmatmul.mubr.msk.f32.gmra.mrb[16].mxu0 %vm1236_vm7, %v2700_v9 }
 0x579   :  { %1424 = vmatprep.mubr.f32.mxu0 %v3246_v3 }
 0x57b   :  { %3154 = vrot.lane.b32.xlu1 %v3103_v61, %s3247_s21  ;;  %1575 = vrot.lane.b32.xlu0 %v2699_v58, %s3257_s14 }
 0x57c   :  { %2709 = vmatmul.mubr.msk.f32.gmra.mrb[18].mxu0 %vm1236_vm7, %v2701_v13 }
 0x57d   :  { %1540 = vmatprep.mubr.f32.mxu0 %v3246_v3 }
 0x57f   :  { %1577 = vrot.lane.b32.xlu1 %v2700_v9, %s3257_s14  ;;  %3144 = vrot.lane.b32.xlu0 %v3113_v1, %s3249_s24 }
 0x583   :  { %3174 = vrot.lane.b32.xlu1 %v3123_v11, %s3249_s24  ;;  %3159 = vrot.lane.b32.xlu0 %v3113_v1, %s3247_s21 }
 0x587   :  { %3179 = vrot.lane.b32.xlu1 %v3123_v11, %s3247_s21  ;;  %3164 = vrot.lane.b32.xlu0 %v3118_v6, %s3249_s24 }
 0x58b   :  { %1191 = vrot.lane.b32.xlu1 %v3509_v41, %s3253_s25  ;;  %3169 = vrot.lane.b32.xlu0 %v3118_v6, %s3247_s21 }
 0x58f   :  { %1195 = vrot.lane.b32.xlu1 %v2700_v9, %s3253_s25  ;;  %1579 = vrot.lane.b32.xlu0 %v2701_v13, %s3257_s14 }
 0x593   :  { %1864 = vperm.xlu1 %3082, %v2726_v14   ;;  %1193 = vrot.lane.b32.xlu0 %v2699_v58, %s3253_s25 }
 0x597   :  { %1874 = vperm.xlu1 %3082, %v2728_v15   ;;  %1197 = vrot.lane.b32.xlu0 %v2701_v13, %s3253_s25 }
 0x59b   :  { %1869 = vperm.xlu0 %3081, %v2727_v16  }
 0x59f   :  { %1879 = vperm.xlu0 %3081, %v2729_v17  }
 0x5d1   :  { %v3105_v20 = vpop.permute.xlu1 %3104 }
 0x5d2   :  { %v3107_v21 = vunpack.i.h.bf16 %v3105_v20  ;;  %v3106_v22 = vunpack.i.l.bf16 %v3105_v20 }
 0x5d4   :  { %v1456_v28 = vsel %vm1455_vm8, %v3106_v22, %v3107_v21 }
 0x5d5   :  { %v3110_v23 = vpop.permute.xlu1 %3109  ;;  %v3115_v24 = vpop.permute.xlu0 %3114 }
 0x5d6   :  { %v3117_v25 = vunpack.i.h.bf16 %v3115_v24  ;;  %v3116_v26 = vunpack.i.l.bf16 %v3115_v24  ;;  %v3112_v38 = vunpack.i.h.bf16 %v3110_v23  ;;  %v3111_v39 = vunpack.i.l.bf16 %v3110_v23 }
 0x5d8   :  { %v2942_v27 = vpack.c.bf16 %v3117_v25, %v3107_v21  ;;  %v1457_v29 = vsel %vm1455_vm8, %v3116_v26, %v3117_v25  ;;  %v1598_v48 = vsel %vm1597_vm9, %v3111_v39, %v3112_v38 }
 0x5d9   :  { %v2944_v30 = vpack.c.bf16 %v1457_v29, %v1456_v28  ;;  %v3120_v31 = vpop.permute.xlu1 %3119 }
 0x5da   :  { %2943 = vmatprep.subr.bf16.mxu0 %v2942_v27  ;;  %v3122_v32 = vunpack.i.h.bf16 %v3120_v31  ;;  %v3121_v33 = vunpack.i.l.bf16 %v3120_v31 }
 0x5db   :  { %2945 = vmatpush1.bf16.msra.mxu0 %v2944_v30 }
 0x5dc   :  { %v1458_v40 = vsel %vm1455_vm8, %v3121_v33, %v3122_v32 }
 0x5dd   :  { %v1436_v34 = vpop.permute.xlu1 %1435  ;;  %v3125_v35 = vpop.permute.xlu0 %3124 }
 0x5de   :  { %v3127_v36 = vunpack.i.h.bf16 %v3125_v35  ;;  %v3126_v37 = vunpack.i.l.bf16 %v3125_v35 }
 0x5e0   :  { %v2946_v41 = vpack.c.bf16 %v3127_v36, %v3122_v32  ;;  %v1459_v42 = vsel %vm1455_vm8, %v3126_v37, %v3127_v36 }
 0x5e1   :  { %v2948_v43 = vpack.c.bf16 %v1459_v42, %v1458_v40  ;;  %v1574_v44 = vpop.permute.xlu1 %1573  ;;  %v3130_v45 = vpop.permute.xlu0 %3129 }
 0x5e2   :  { %v3132_v46 = vunpack.i.h.bf16 %v3130_v45  ;;  %v3131_v47 = vunpack.i.l.bf16 %v3130_v45  ;;  %2947 = vmatprep.subr.bf16.mxu0 %v2946_v41 }
 0x5e3   :  { %2949 = vmatpush1.bf16.msra.mxu0 %v2948_v43 }
 0x5e4   :  { %v2950_v49 = vpack.c.bf16 %v3132_v46, %v3112_v38  ;;  %v1599_v50 = vsel %vm1597_vm9, %v3131_v47, %v3132_v46  ;;  %v2719_v46 = vld [vmem:[%s3787_s1 + $0x98] sm:$0xff] }
 0x5e5   :  { %v2952_v51 = vpack.c.bf16 %v1599_v50, %v1598_v48  ;;  %v3140_v52 = vpop.permute.xlu1 %3139  ;;  %v3135_v53 = vpop.permute.xlu0 %3134  ;;  %v2720_v48 = vld [vmem:[%s3787_s1 + $0xa8] sm:$0xff]  ;;  %v2721_v50 = vld [vmem:[%s3787_s1 + $0xb8] sm:$0xff] }
 0x5e6   :  { %2710 = vmatmul.mubr.msk.f32.vlgmr.msra.gmra.mrb[12].mxu0 %vm1236_vm7, %v1432_v18  ;;  %2951 = vmatprep.subr.bf16.mxu0 %v2950_v49  ;;  %v3137_v54 = vunpack.i.h.bf16 %v3135_v53  ;;  %v3136_v55 = vunpack.i.l.bf16 %v3135_v53  ;;  %v3142_v2 = vunpack.i.h.bf16 %v3140_v52  ;;  %v3141_v4 = vunpack.i.l.bf16 %v3140_v52 }
 0x5e7   :  { %2953 = vmatpush1.bf16.msra.mxu0 %v2952_v51  ;;  %1546 = vmatprep.mubr.f32.mxu0 %v3246_v3 }
 0x5e8   :  { %v1600_v60 = vsel %vm1597_vm9, %v3136_v55, %v3137_v54  ;;  %v1224_v9 = vsel %vm1223_vm10, %v3141_v4, %v3142_v2 }
 0x5e9   :  { %v3150_v56 = vpop.permute.xlu1 %3149  ;;  %v1438_v57 = vpop.permute.xlu0 %1437 }
 0x5ea   :  { %v3152_v58 = vunpack.i.h.bf16 %v3150_v56  ;;  %v3151_v59 = vunpack.i.l.bf16 %v3150_v56  ;;  %2711 = vmatmul.mubr.msk.f32.gmra.mrb[14].mxu0 %vm1236_vm7, %v1434_v19 }
 0x5eb   :  { %1552 = vmatprep.mubr.f32.mxu0 %v3246_v3 }
 0x5ec   :  { %v1601_v61 = vsel %vm1597_vm9, %v3151_v59, %v3152_v58  ;;  %v2954_v62 = vpack.c.bf16 %v3152_v58, %v3137_v54 }
 0x5ed   :  { %v2956_v63 = vpack.c.bf16 %v1601_v61, %v1600_v60  ;;  %v3155_v0 = vpop.permute.xlu1 %3154  ;;  %v1576_v1 = vpop.permute.xlu0 %1575 }
 0x5ee   :  { %2712 = vmatmul.mubr.msk.f32.gmra.mrb[16].mxu0 %vm1236_vm7, %v1436_v34  ;;  %2955 = vmatprep.subr.bf16.mxu0 %v2954_v62  ;;  %v3157_v10 = vunpack.i.h.bf16 %v3155_v0  ;;  %v3156_v11 = vunpack.i.l.bf16 %v3155_v0 }
 0x5ef   :  { %2957 = vmatpush1.bf16.msra.mxu0 %v2956_v63  ;;  %1558 = vmatprep.mubr.f32.mxu0 %v3246_v3 }
 0x5f0   :  { %v1736_v21 = vsel %vm1735_vm11, %v3156_v11, %v3157_v10 }
 0x5f1   :  { %v1578_v5 = vpop.permute.xlu1 %1577  ;;  %v3145_v6 = vpop.permute.xlu0 %3144 }
 0x5f2   :  { %v3147_v7 = vunpack.i.h.bf16 %v3145_v6  ;;  %v3146_v8 = vunpack.i.l.bf16 %v3145_v6  ;;  %2713 = vmatmul.mubr.msk.f32.gmra.mrb[18].mxu0 %vm1236_vm7, %v1438_v57 }
 0x5f3   :  { %1682 = vmatprep.mubr.f32.mxu0 %v3246_v3 }
 0x5f4   :  { %v2926_v12 = vpack.c.bf16 %v3147_v7, %v3142_v2  ;;  %v1225_v13 = vsel %vm1223_vm10, %v3146_v8, %v3147_v7 }
 0x5f5   :  { %v2928_v14 = vpack.c.bf16 %v1225_v13, %v1224_v9  ;;  %v3175_v15 = vpop.permute.xlu1 %3174  ;;  %v3160_v16 = vpop.permute.xlu0 %3159 }
 0x5f6   :  { %v3162_v17 = vunpack.i.h.bf16 %v3160_v16  ;;  %v3161_v18 = vunpack.i.l.bf16 %v3160_v16  ;;  %2927 = vmatprep.subr.bf16.mxu1 %v2926_v12  ;;  %2714 = vmatmul.mubr.msk.f32.vlgmr.msra.gmra.mrb[12].mxu0 %vm1236_vm7, %v1574_v44  ;;  %v3177_v19 = vunpack.i.h.bf16 %v3175_v15  ;;  %v3176_v20 = vunpack.i.l.bf16 %v3175_v15  ;;  %v2718_v44 = vld [vmem:[%s3787_s1 + $0x88] sm:$0xff] }
 0x5f7   :  { %2929 = vmatpush1.bf16.msra.mxu1 %v2928_v14  ;;  %1688 = vmatprep.mubr.f32.mxu0 %v3246_v3 }
 0x5f8   :  { %v2958_v22 = vpack.c.bf16 %v3162_v17, %v3157_v10  ;;  %v1737_v23 = vsel %vm1735_vm11, %v3161_v18, %v3162_v17  ;;  %v1227_v29 = vsel %vm1223_vm10, %v3176_v20, %v3177_v19 }
 0x5f9   :  { %v2960_v24 = vpack.c.bf16 %v1737_v23, %v1736_v21  ;;  %v3180_v25 = vpop.permute.xlu1 %3179  ;;  %v3165_v26 = vpop.permute.xlu0 %3164 }
 0x5fa   :  { %v3167_v28 = vunpack.i.h.bf16 %v3165_v26  ;;  %v3166_v27 = vunpack.i.l.bf16 %v3165_v26  ;;  %2715 = vmatmul.mubr.msk.f32.gmra.mrb[14].mxu0 %vm1236_vm7, %v1576_v1  ;;  %2959 = vmatprep.subr.bf16.mxu0 %v2958_v22  ;;  %v3182_v30 = vunpack.i.h.bf16 %v3180_v25  ;;  %v3181_v31 = vunpack.i.l.bf16 %v3180_v25 }
 0x5fb   :  { %2961 = vmatpush1.bf16.msra.mxu0 %v2960_v24  ;;  %1694 = vmatprep.mubr.f32.mxu0 %v3246_v3 }
 0x5fc   :  { %v2930_v32 = vpack.c.bf16 %v3177_v19, %v3167_v28  ;;  %v1226_v33 = vsel %vm1223_vm10, %v3166_v27, %v3167_v28  ;;  %v1739_v38 = vsel %vm1735_vm11, %v3181_v31, %v3182_v30 }
 0x5fd   :  { %v2932_v34 = vpack.c.bf16 %v1227_v29, %v1226_v33  ;;  %v3170_v35 = vpop.permute.xlu0 %3169  ;;  %v1192_v41 = vpop.permute.xlu1 %1191 }
 0x5fe   :  { %v3172_v36 = vunpack.i.h.bf16 %v3170_v35  ;;  %v3171_v37 = vunpack.i.l.bf16 %v3170_v35  ;;  %2931 = vmatprep.subr.bf16.mxu1 %v2930_v32  ;;  %2716 = vmatmul.mubr.msk.f32.gmra.mrb[16].mxu0 %vm1236_vm7, %v1578_v5 }
 0x5ff   :  { %2933 = vmatpush1.bf16.msra.mxu1 %v2932_v34  ;;  %1700 = vmatprep.mubr.f32.mxu0 %v3246_v3 }
 0x600   :  { %v2962_v39 = vpack.c.bf16 %v3182_v30, %v3172_v36  ;;  %v1738_v40 = vsel %vm1735_vm11, %v3171_v37, %v3172_v36 }
 0x601   :  { %v2964_v42 = vpack.c.bf16 %v1739_v38, %v1738_v40  ;;  %v1580_v43 = vpop.permute.xlu0 %1579  ;;  %v1196_v47 = vpop.permute.xlu1 %1195 }
 0x602   :  { %2717 = vmatmul.mubr.msk.f32.gmra.mrb[18].mxu0 %vm1236_vm7, %v1580_v43  ;;  %2963 = vmatprep.subr.bf16.mxu0 %v2962_v39 }
 0x603   :  { %2965 = vmatpush1.bf16.msra.mxu0 %v2964_v42  ;;  %2702 = vmatmul.mubr.msk.f32.vlgmr.msra.gmra.mrb[6].mxu1 %vm1236_vm7, %v1192_v41 }
 0x604   :  { %1824 = vmatprep.mubr.f32.mxu0 %v3246_v3  ;;  %1315 = vmatprep.mubr.f32.mxu1 %v3246_v3 }
 0x605   :  { %v1194_v45 = vpop.permute.xlu0 %1193 }
 0x606   :  { %2722 = vmatmul.mubr.msk.f32.vlgmr.msra.gmra.mrb[12].mxu0 %vm1236_vm7, %v2718_v44 }
 0x607   :  { %1830 = vmatprep.mubr.f32.mxu0 %v3246_v3  ;;  %2703 = vmatmul.mubr.msk.f32.gmra.mrb[8].mxu1 %vm1236_vm7, %v1194_v45 }
 0x608   :  { %1321 = vmatprep.mubr.f32.mxu1 %v3246_v3 }
 0x609   :  { %v1198_v49 = vpop.permute.xlu0 %1197 }
 0x60a   :  { %2723 = vmatmul.mubr.msk.f32.gmra.mrb[14].mxu0 %vm1236_vm7, %v2719_v46 }
 0x60b   :  { %1836 = vmatprep.mubr.f32.mxu0 %v3246_v3  ;;  %2704 = vmatmul.mubr.msk.f32.gmra.mrb[10].mxu1 %vm1236_vm7, %v1196_v47 }
 0x60c   :  { %1327 = vmatprep.mubr.f32.mxu1 %v3246_v3 }
 0x60e   :  { %2724 = vmatmul.mubr.msk.f32.gmra.mrb[16].mxu0 %vm1236_vm7, %v2720_v48 }
 0x60f   :  { %1842 = vmatprep.mubr.f32.mxu0 %v3246_v3  ;;  %2705 = vmatmul.mubr.msk.f32.gmra.mrb[12].mxu1 %vm1236_vm7, %v1198_v49 }
 0x610   :  { %2082 = vmatprep.mubr.f32.mxu1 %v3246_v3 }
 0x612   :  { %2725 = vmatmul.mubr.msk.f32.gmra.mrb[18].mxu0 %vm1236_vm7, %v2721_v50  ;;  %v1865_v57 = vpop.permute.xlu1 %1864 }
 0x616   :  { %v1875_v16 = vpop.permute.xlu1 %1874 }
 0x61a   :  { %v1870_v4 = vpop.permute.xlu0 %1869 }
 0x61e   :  { %v1880_v24 = vpop.permute.xlu0 %1879 }
 0x6d6   :  { %v1311_v51 = vpop.f32.mrb[6].mxu1 }
 0x6d7   :  { %v1313_v52 = vpop.f32.mrb[7].mxu1 }
 0x6d9   :  { %v1826_v53 = vpop.f32.mrb[12].mxu0 }
 0x6da   :  { %v3002_v54 = vadd.f32 %v1826_v53, %v1311_v51  ;;  %v1828_v55 = vpop.f32.mrb[13].mxu0  ;;  %v1317_v56 = vpop.f32.mrb[8].mxu1 }
 0x6db   :  { %v3003_v58 = vadd.f32 %v1828_v55, %v1313_v52  ;;  %v1319_v59 = vpop.f32.mrb[9].mxu1 }
 0x6dc   :  { %v1882_v60 = vadd.f32 %v3002_v54, %v1865_v57 }
 0x6dd   :  { %v1883_v61 = vadd.f32 %v3003_v58, %v1865_v57  ;;  %v1832_v62 = vpop.f32.mrb[14].mxu0  ;;  %v3688_v58 = vld [vmem:[%s3787_s1 + $0xc0] sm:$0xff] }
 0x6de   :  { %v1890_v63 = vmax.f32 %v1882_v60, 0.0  ;;  %v3004_v0 = vadd.f32 %v1832_v62, %v1317_v56  ;;  %v1834_v1 = vpop.f32.mrb[15].mxu0  ;;  %v1323_v2 = vpop.f32.mrb[10].mxu1 }
 0x6df   :  { %v1891_v3 = vmax.f32 %v1883_v61, 0.0  ;;  %v3005_v5 = vadd.f32 %v1834_v1, %v1319_v59  ;;  %v1325_v6 = vpop.f32.mrb[11].mxu1  ;;  %v2738_v1 = vld [vmem:[%s3789_s3 + $0x60] sm:$0xff] }
 0x6e0   :  { %v1884_v7 = vadd.f32 %v3004_v0, %v1870_v4  ;;  %1902 = vrot.lane.b32.xlu1 %v1890_v63, %s3258_s2  ;;  %v3701_v0 = vld [vmem:[%s3787_s1 + $0xd0] sm:$0xff] }
 0x6e1   :  { %1925 = vrot.lane.b32.xlu0 %v1891_v3, %s3249_s24  ;;  %v1838_v8 = vpop.f32.mrb[16].mxu0  ;;  %v1885_v13 = vadd.f32 %v3005_v5, %v1870_v4 }
 0x6e2   :  { %v1892_v9 = vmax.f32 %v1884_v7, 0.0  ;;  %v3006_v10 = vadd.f32 %v1838_v8, %v1323_v2  ;;  %v1840_v11 = vpop.f32.mrb[17].mxu0  ;;  %v1329_v12 = vpop.f32.mrb[12].mxu1  ;;  %v2739_v2 = vld [vmem:[%s3789_s3 + $0x68] sm:$0xff] }
 0x6e3   :  { %v3007_v14 = vadd.f32 %v1840_v11, %v1325_v6  ;;  %v1331_v15 = vpop.f32.mrb[13].mxu1  ;;  %v1893_v21 = vmax.f32 %v1885_v13, 0.0 }
 0x6e4   :  { %1923 = vrot.lane.b32.xlu1 %v1890_v63, %s3249_s24  ;;  %v1886_v18 = vadd.f32 %v3006_v10, %v1875_v16 }
 0x6e5   :  { %1904 = vrot.lane.b32.xlu0 %v1892_v9, %s3258_s2  ;;  %v1844_v17 = vpop.f32.mrb[18].mxu0  ;;  %v1887_v22 = vadd.f32 %v3007_v14, %v1875_v16 }
 0x6e6   :  { %v3008_v19 = vadd.f32 %v1844_v17, %v1329_v12  ;;  %v1846_v20 = vpop.f32.mrb[19].mxu0  ;;  %v1894_v25 = vmax.f32 %v1886_v18, 0.0 }
 0x6e7   :  { %v3009_v23 = vadd.f32 %v1846_v20, %v1331_v15  ;;  %v1895_v26 = vmax.f32 %v1887_v22, 0.0 }
 0x6e8   :  { %1927 = vrot.lane.b32.xlu1 %v1892_v9, %s3249_s24  ;;  %v1888_v28 = vadd.f32 %v3008_v19, %v1880_v24 }
 0x6e9   :  { %1929 = vrot.lane.b32.xlu0 %v1893_v21, %s3249_s24  ;;  %v1889_v29 = vadd.f32 %v3009_v23, %v1880_v24 }
 0x6ea   :  { %v1896_v27 = vmax.f32 %v1888_v28, 0.0 }
 0x6eb   :  { %v1897_v30 = vmax.f32 %v1889_v29, 0.0  ;;  %v3727_v29 = vld [vmem:[#allocation3] sm:$0xff] }
 0x6ec   :  { %1906 = vrot.lane.b32.xlu1 %v1894_v25, %s3258_s2 }
 0x6ed   :  { %1933 = vrot.lane.b32.xlu0 %v1895_v26, %s3249_s24 }
 0x6f0   :  { %1931 = vrot.lane.b32.xlu1 %v1894_v25, %s3249_s24 }
 0x6f1   :  { %1908 = vrot.lane.b32.xlu0 %v1896_v27, %s3258_s2 }
 0x6f4   :  { %1935 = vrot.lane.b32.xlu1 %v1896_v27, %s3249_s24 }
 0x6f5   :  { %1937 = vrot.lane.b32.xlu0 %v1897_v30, %s3249_s24 }
 0x752   :  { %v1903_v31 = vpop.permute.xlu1 %1902 }
 0x753   :  { %1915 = vst.msk [vmem:[#allocation2] sm:$0xff] %vm1914_vm12, %v1903_v31  ;;  %v1926_v32 = vpop.permute.xlu0 %1925 }
 0x754   :  { %1954 = vst.msk [vmem:[#allocation2 + $0x8] sm:$0xff] %vm1953_vm13, %v1926_v32 }
 0x756   :  { %v1924_v33 = vpop.permute.xlu1 %1923 }
 0x757   :  { %v1939_v34 = vsel %vm1223_vm10, %v1924_v33, %v1926_v32  ;;  %v1905_v35 = vpop.permute.xlu0 %1904 }
 0x758   :  { %1952 = vst.msk [vmem:[#allocation2] sm:$0xff] %vm1951_vm14, %v1939_v34 }
 0x759   :  { %1916 = vst.msk [vmem:[#allocation2 + $0x10] sm:$0xff] %vm1914_vm12, %v1905_v35 }
 0x75a   :  { %v1928_v36 = vpop.permute.xlu1 %1927 }
 0x75b   :  { %v1930_v37 = vpop.permute.xlu0 %1929  ;;  %v3658_v42 = vld [vmem:[#allocation2 + $0x8] sm:$0xff] }
 0x75c   :  { %v1940_v38 = vsel %vm1223_vm10, %v1928_v36, %v1930_v37  ;;  %1956 = vst.msk [vmem:[#allocation2 + $0x18] sm:$0xff] %vm1953_vm13, %v1930_v37 }
 0x75d   :  { %1955 = vst.msk [vmem:[#allocation2 + $0x10] sm:$0xff] %vm1951_vm14, %v1940_v38 }
 0x75e   :  { %v1907_v39 = vpop.permute.xlu1 %1906 }
 0x75f   :  { %1917 = vst.msk [vmem:[#allocation2 + $0x20] sm:$0xff] %vm1914_vm12, %v1907_v39  ;;  %v1934_v40 = vpop.permute.xlu0 %1933  ;;  %v3656_v41 = vld [vmem:[#allocation2] sm:$0xff] }
 0x760   :  { %1958 = vst.msk [vmem:[#allocation2 + $0x28] sm:$0xff] %vm1953_vm13, %v1934_v40  ;;  %v3183_v43 = vpack.i.bf16 %v3658_v42, %v3656_v41 }
 0x762   :  { %v1932_v44 = vpop.permute.xlu1 %1931  ;;  %3184 = vrot.lane.b32.xlu1 %v3183_v43, %s3249_s24 }
 0x763   :  { %v1941_v45 = vsel %vm1223_vm10, %v1932_v44, %v1934_v40  ;;  %v1909_v46 = vpop.permute.xlu0 %1908  ;;  %v3665_v47 = vld [vmem:[#allocation2 + $0x18] sm:$0xff] }
 0x764   :  { %1957 = vst.msk [vmem:[#allocation2 + $0x20] sm:$0xff] %vm1951_vm14, %v1941_v45  ;;  %v3669_v48 = vld [vmem:[#allocation2 + $0x10] sm:$0xff]  ;;  %v2974_v49 = vpack.c.bf16 %v3665_v47, %v3658_v42 }
 0x765   :  { %1918 = vst.msk [vmem:[#allocation2 + $0x30] sm:$0xff] %vm1914_vm12, %v1909_v46  ;;  %v3188_v50 = vpack.i.bf16 %v3665_v47, %v3669_v48  ;;  %v2976_v51 = vpack.c.bf16 %v3669_v48, %v3656_v41 }
 0x766   :  { %v1936_v52 = vpop.permute.xlu1 %1935 }
 0x767   :  { %3189 = vrot.lane.b32.xlu0 %v3188_v50, %s3249_s24  ;;  %v1938_v53 = vpop.permute.xlu0 %1937  ;;  %v1969_v56 = vld [vmem:[#allocation2 + $0x28] sm:$0xff] }
 0x768   :  { %v1942_v54 = vsel %vm1223_vm10, %v1936_v52, %v1938_v53  ;;  %1960 = vst.msk [vmem:[#allocation2 + $0x38] sm:$0xff] %vm1953_vm13, %v1938_v53 }
 0x769   :  { %1959 = vst.msk [vmem:[#allocation2 + $0x30] sm:$0xff] %vm1951_vm14, %v1942_v54 }
 0x76b   :  { %v3681_v55 = vld [vmem:[#allocation2 + $0x20] sm:$0xff] }
 0x76c   :  { %v3193_v57 = vpack.i.bf16 %v1969_v56, %v3681_v55 }
 0x76e   :  { %3194 = vrot.lane.b32.xlu1 %v3193_v57, %s3249_s24 }
 0x76f   :  { %v1971_v59 = vld [vmem:[#allocation2 + $0x38] sm:$0xff] }
 0x770   :  { %v3690_v60 = vld [vmem:[#allocation2 + $0x30] sm:$0xff]  ;;  %v2978_v61 = vpack.c.bf16 %v1971_v59, %v1969_v56 }
 0x771   :  { %v3198_v62 = vpack.i.bf16 %v1971_v59, %v3690_v60  ;;  %v2980_v63 = vpack.c.bf16 %v3690_v60, %v3681_v55 }
 0x772   :  { %1974 = vrot.lane.b32.xlu1 %v3688_v58, %s3253_s25 }
 0x773   :  { %3199 = vrot.lane.b32.xlu0 %v3198_v62, %s3249_s24 }
 0x776   :  { %3204 = vrot.lane.b32.xlu1 %v3183_v43, %s3248_s0 }
 0x777   :  { %1976 = vrot.lane.b32.xlu0 %v3701_v0, %s3253_s25 }
 0x77a   :  { %3214 = vrot.lane.b32.xlu1 %v3193_v57, %s3248_s0 }
 0x77b   :  { %3209 = vrot.lane.b32.xlu0 %v3188_v50, %s3248_s0 }
 0x77e   :  { %2176 = vrot.lane.b32.xlu1 %v3688_v58, %s3256_s30 }
 0x77f   :  { %3219 = vrot.lane.b32.xlu0 %v3198_v62, %s3248_s0 }
 0x782   :  { %2298 = vperm.xlu1 %3082, %v2738_v1  }
 0x783   :  { %2178 = vrot.lane.b32.xlu0 %v3701_v0, %s3256_s30 }
 0x787   :  { %2303 = vperm.xlu0 %3081, %v2739_v2  }
 0x7d4   :  { %v3185_v4 = vpop.permute.xlu1 %3184 }
 0x7d5   :  { %v3187_v3 = vunpack.i.h.bf16 %v3185_v4  ;;  %v3186_v5 = vunpack.i.l.bf16 %v3185_v4 }
 0x7d7   :  { %v2002_v9 = vsel %vm1223_vm10, %v3186_v5, %v3187_v3 }
 0x7d9   :  { %v3190_v6 = vpop.permute.xlu0 %3189 }
 0x7da   :  { %v3192_v7 = vunpack.i.h.bf16 %v3190_v6  ;;  %v3191_v8 = vunpack.i.l.bf16 %v3190_v6 }
 0x7dc   :  { %v2966_v10 = vpack.c.bf16 %v3192_v7, %v3187_v3  ;;  %v2003_v11 = vsel %vm1223_vm10, %v3191_v8, %v3192_v7 }
 0x7dd   :  { %v2968_v12 = vpack.c.bf16 %v2003_v11, %v2002_v9  ;;  %v2740_v9 = vld [vmem:[%s3787_s1 + $0x100] ss:$0 sm:$0xff] }
 0x7de   :  { %2967 = vmatprep.subr.bf16.mxu1 %v2966_v10 }
 0x7df   :  { %2969 = vmatpush1.bf16.msra.mxu1 %v2968_v12 }
 0x7e0   :  { %v3195_v13 = vpop.permute.xlu1 %3194 }
 0x7e1   :  { %v3197_v14 = vunpack.i.h.bf16 %v3195_v13  ;;  %v3196_v15 = vunpack.i.l.bf16 %v3195_v13  ;;  %v2744_v13 = vld [vmem:[%s3789_s3 + $0x80] sm:$0x1] }
 0x7e3   :  { %v2004_v20 = vsel %vm1223_vm10, %v3196_v15, %v3197_v14 }
 0x7e4   :  { %v1975_v16 = vpop.permute.xlu1 %1974 }
 0x7e5   :  { %v3200_v17 = vpop.permute.xlu0 %3199 }
 0x7e6   :  { %v3202_v18 = vunpack.i.h.bf16 %v3200_v17  ;;  %v3201_v19 = vunpack.i.l.bf16 %v3200_v17 }
 0x7e8   :  { %v2970_v21 = vpack.c.bf16 %v3202_v18, %v3197_v14  ;;  %v2005_v22 = vsel %vm1223_vm10, %v3201_v19, %v3202_v18  ;;  %v3205_v25 = vpop.permute.xlu1 %3204 }
 0x7e9   :  { %v2972_v23 = vpack.c.bf16 %v2005_v22, %v2004_v20  ;;  %v1977_v24 = vpop.permute.xlu0 %1976  ;;  %v3207_v30 = vunpack.i.h.bf16 %v3205_v25  ;;  %v3206_v31 = vunpack.i.l.bf16 %v3205_v25 }
 0x7ea   :  { %2971 = vmatprep.subr.bf16.mxu1 %v2970_v21 }
 0x7eb   :  { %2973 = vmatpush1.bf16.msra.mxu1 %v2972_v23  ;;  %v2196_v38 = vsel %vm1455_vm8, %v3206_v31, %v3207_v30 }
 0x7ec   :  { %2975 = vmatprep.subr.bf16.mxu1 %v2974_v49  ;;  %v3215_v32 = vpop.permute.xlu1 %3214 }
 0x7ed   :  { %v3210_v26 = vpop.permute.xlu0 %3209  ;;  %v3217_v39 = vunpack.i.h.bf16 %v3215_v32  ;;  %v3216_v40 = vunpack.i.l.bf16 %v3215_v32 }
 0x7ee   :  { %v3212_v28 = vunpack.i.h.bf16 %v3210_v26  ;;  %v3211_v27 = vunpack.i.l.bf16 %v3210_v26  ;;  %2732 = vmatmul.mubr.msk.f32.vlgmr.msra.gmra.mrb[14].mxu1 %vm1236_vm7, %v1975_v16 }
 0x7ef   :  { %2977 = vmatpush1.bf16.msra.mxu1 %v2976_v51  ;;  %2088 = vmatprep.mubr.f32.mxu1 %v3727_v29  ;;  %v2198_v44 = vsel %vm1455_vm8, %v3216_v40, %v3217_v39 }
 0x7f0   :  { %2979 = vmatprep.subr.bf16.mxu1 %v2978_v61  ;;  %v2982_v34 = vpack.c.bf16 %v3212_v28, %v3207_v30  ;;  %v2197_v35 = vsel %vm1455_vm8, %v3211_v27, %v3212_v28  ;;  %v2177_v46 = vpop.permute.xlu1 %2176 }
 0x7f1   :  { %v3220_v33 = vpop.permute.xlu0 %3219  ;;  %v2984_v41 = vpack.c.bf16 %v2197_v35, %v2196_v38 }
 0x7f2   :  { %v3222_v36 = vunpack.i.h.bf16 %v3220_v33  ;;  %v3221_v37 = vunpack.i.l.bf16 %v3220_v33  ;;  %2733 = vmatmul.mubr.msk.f32.gmra.mrb[16].mxu1 %vm1236_vm7, %v1977_v24 }
 0x7f3   :  { %2981 = vmatpush1.bf16.msra.mxu1 %v2980_v63  ;;  %2163 = vmatprep.mubr.f32.mxu1 %v3727_v29 }
 0x7f4   :  { %2983 = vmatprep.subr.bf16.mxu1 %v2982_v34  ;;  %v2986_v42 = vpack.c.bf16 %v3222_v36, %v3217_v39  ;;  %v2199_v43 = vsel %vm1455_vm8, %v3221_v37, %v3222_v36 }
 0x7f5   :  { %v2988_v45 = vpack.c.bf16 %v2199_v43, %v2198_v44  ;;  %v2179_v47 = vpop.permute.xlu0 %2178 }
 0x7f6   :  { %2734 = vmatmul.mubr.msk.f32.vlgmr.msra.gmra.mrb[14].mxu1 %vm1236_vm7, %v3688_v58 }
 0x7f7   :  { %2985 = vmatpush1.bf16.msra.mxu1 %v2984_v41  ;;  %2169 = vmatprep.mubr.f32.mxu1 %v3727_v29 }
 0x7f8   :  { %2987 = vmatprep.subr.bf16.mxu1 %v2986_v42 }
 0x7fa   :  { %2735 = vmatmul.mubr.msk.f32.gmra.mrb[16].mxu1 %vm1236_vm7, %v3701_v0 }
 0x7fb   :  { %2989 = vmatpush1.bf16.msra.mxu1 %v2988_v45  ;;  %2276 = vmatprep.mubr.f32.mxu1 %v3727_v29 }
 0x7fe   :  { %2736 = vmatmul.mubr.msk.f32.vlgmr.msra.gmra.mrb[14].mxu1 %vm1236_vm7, %v2177_v46 }
 0x7ff   :  { %2282 = vmatprep.mubr.f32.mxu1 %v3727_v29 }
 0x801   :  { %v2299_v48 = vpop.permute.xlu1 %2298 }
 0x802   :  { %2737 = vmatmul.mubr.msk.f32.gmra.mrb[16].mxu1 %vm1236_vm7, %v2179_v47 }
 0x803   :  { %2432 = vmatprep.mubr.f32.mxu1 %v3727_v29 }
 0x806   :  { %v2304_v54 = vpop.permute.xlu0 %2303 }
 0x8d1   :  { %v2278_v49 = vpop.f32.mrb[14].mxu1 }
 0x8d2   :  { %v2306_v50 = vadd.f32 %v2299_v48, %v2278_v49  ;;  %v2280_v51 = vpop.f32.mrb[15].mxu1 }
 0x8d3   :  { %v2307_v53 = vadd.f32 %v2299_v48, %v2280_v51 }
 0x8d4   :  { %v2310_v52 = vmax.f32 %v2306_v50, 0.0 }
 0x8d5   :  { %v2284_v55 = vpop.f32.mrb[16].mxu1  ;;  %v2311_v58 = vmax.f32 %v2307_v53, 0.0 }
 0x8d6   :  { %v2308_v56 = vadd.f32 %v2304_v54, %v2284_v55  ;;  %2316 = vrot.lane.b32.xlu1 %v2310_v52, %s3258_s2  ;;  %v2286_v57 = vpop.f32.mrb[17].mxu1 }
 0x8d7   :  { %v2309_v60 = vadd.f32 %v2304_v54, %v2286_v57 }
 0x8d8   :  { %v2312_v59 = vmax.f32 %v2308_v56, 0.0 }
 0x8d9   :  { %v2313_v61 = vmax.f32 %v2309_v60, 0.0 }
 0x8da   :  { %2326 = vrot.lane.b32.xlu1 %v2311_v58, %s3258_s2  ;;  %2318 = vrot.lane.b32.xlu0 %v2312_v59, %s3258_s2 }
 0x8de   :  { %2328 = vrot.lane.b32.xlu0 %v2313_v61, %s3258_s2 }
 0x948   :  { %v2317_v62 = vpop.permute.xlu1 %2316 }
 0x949   :  { %2322 = vst.msk [vmem:[#allocation3] sm:$0xff] %vm1914_vm12, %v2317_v62 }
 0x94a   :  { %2335 = vst.msk [vmem:[#allocation3] sm:$0xff] %vm1951_vm14, %v2317_v62 }
 0x94c   :  { %v2327_v63 = vpop.permute.xlu1 %2326  ;;  %v2319_v0 = vpop.permute.xlu0 %2318 }
 0x94d   :  { %v2331_v1 = vsel %vm2330_vm15, %v2317_v62, %v2327_v63  ;;  %2323 = vst.msk [vmem:[#allocation3 + $0x10] sm:$0xff] %vm1914_vm12, %v2319_v0 }
 0x94e   :  { %2336 = vst.msk [vmem:[#allocation3 + $0x8] sm:$0xff] %vm1953_vm13, %v2331_v1 }
 0x94f   :  { %2337 = vst.msk [vmem:[#allocation3 + $0x10] sm:$0xff] %vm1951_vm14, %v2319_v0 }
 0x950   :  { %v2329_v2 = vpop.permute.xlu0 %2328 }
 0x951   :  { %v2332_v4 = vsel %vm2330_vm15, %v2319_v0, %v2329_v2  ;;  %v2341_v3 = vld [vmem:[#allocation3] sm:$0xff] }
 0x952   :  { %2338 = vst.msk [vmem:[#allocation3 + $0x18] sm:$0xff] %vm1953_vm13, %v2332_v4 }
 0x955   :  { %v2342_v5 = vld [vmem:[#allocation3 + $0x8] sm:$0xff] }
 0x956   :  { %v2343_v6 = vld [vmem:[#allocation3 + $0x10] sm:$0xff]  ;;  %v3223_v7 = vpack.i.bf16 %v2342_v5, %v2341_v3 }
 0x957   :  { %v2996_v8 = vpack.c.bf16 %v2343_v6, %v2341_v3 }
 0x958   :  { %3224 = vrot.lane.b32.xlu1 %v3223_v7, %s3249_s24 }
 0x959   :  { %v2344_v10 = vld [vmem:[#allocation3 + $0x18] sm:$0xff] }
 0x95a   :  { %v3228_v11 = vpack.i.bf16 %v2344_v10, %v2343_v6  ;;  %v2994_v12 = vpack.c.bf16 %v2344_v10, %v2342_v5 }
 0x95c   :  { %2346 = vrot.lane.b32.xlu1 %v2740_v9, %s3252_s18  ;;  %3229 = vrot.lane.b32.xlu0 %v3228_v11, %s3249_s24 }
 0x960   :  { %3239 = vrot.lane.b32.xlu1 %v3228_v11, %s3248_s0  ;;  %3234 = vrot.lane.b32.xlu0 %v3223_v7, %s3248_s0 }
 0x964   :  { %2607 = vperm.xlu1 %3082, %v2744_v13   ;;  %2512 = vrot.lane.b32.xlu0 %v2740_v9, %s3253_s25 }
 0x9ca   :  { %v3225_v14 = vpop.permute.xlu1 %3224 }
 0x9cb   :  { %v3227_v15 = vunpack.i.h.bf16 %v3225_v14  ;;  %v3226_v16 = vunpack.i.l.bf16 %v3225_v14 }
 0x9cd   :  { %v2360_v21 = vsel %vm1223_vm10, %v3226_v16, %v3227_v15 }
 0x9ce   :  { %v2347_v17 = vpop.permute.xlu1 %2346  ;;  %v3230_v18 = vpop.permute.xlu0 %3229 }
 0x9cf   :  { %v3232_v19 = vunpack.i.h.bf16 %v3230_v18  ;;  %v3231_v20 = vunpack.i.l.bf16 %v3230_v18 }
 0x9d1   :  { %v2990_v22 = vpack.c.bf16 %v3232_v19, %v3227_v15  ;;  %v2361_v23 = vsel %vm1223_vm10, %v3231_v20, %v3232_v19 }
 0x9d2   :  { %v2992_v24 = vpack.c.bf16 %v2361_v23, %v2360_v21  ;;  %v3240_v25 = vpop.permute.xlu1 %3239  ;;  %v3235_v26 = vpop.permute.xlu0 %3234 }
 0x9d3   :  { %v3242_v28 = vunpack.i.h.bf16 %v3240_v25  ;;  %v3237_v27 = vunpack.i.h.bf16 %v3235_v26  ;;  %2991 = vmatprep.subr.bf16.mxu1 %v2990_v22  ;;  %v3241_v30 = vunpack.i.l.bf16 %v3240_v25  ;;  %v3236_v32 = vunpack.i.l.bf16 %v3235_v26 }
 0x9d4   :  { %2993 = vmatpush1.bf16.msra.mxu1 %v2992_v24 }
 0x9d5   :  { %2995 = vmatprep.subr.bf16.mxu1 %v2994_v12  ;;  %v2998_v31 = vpack.c.bf16 %v3242_v28, %v3237_v27  ;;  %v2523_v33 = vsel %vm1455_vm8, %v3241_v30, %v3242_v28  ;;  %v2522_v34 = vsel %vm1455_vm8, %v3236_v32, %v3237_v27 }
 0x9d6   :  { %v3000_v35 = vpack.c.bf16 %v2523_v33, %v2522_v34  ;;  %v2513_v36 = vpop.permute.xlu0 %2512 }
 0x9d7   :  { %2741 = vmatmul.mubr.msk.f32.vlgmr.msra.gmra.mrb[18].mxu1 %vm33_vm1, %v2347_v17 }
 0x9d8   :  { %2997 = vmatpush1.bf16.msra.mxu1 %v2996_v8  ;;  %2505 = vmatprep.mubr.f32.mxu1 %v3727_v29 }
 0x9d9   :  { %2999 = vmatprep.subr.bf16.mxu1 %v2998_v31 }
 0x9df   :  { %2742 = vmatmul.mubr.msk.f32.vlgmr.msra.gmra.mrb[18].mxu1 %vm33_vm1, %v2740_v9 }
 0x9e0   :  { %3001 = vmatpush1.bf16.msra.mxu1 %v3000_v35  ;;  %2594 = vmatprep.mubr.f32.mxu1 %v3727_v29 }
 0x9e3   :  { %v2608_v37 = vpop.permute.xlu1 %2607 }
 0x9e7   :  { %2743 = vmatmul.mubr.msk.f32.vlgmr.msra.gmra.mrb[18].mxu1 %vm33_vm1, %v2513_v36 }
 0xaba   :  { %v2596_v38 = vpop.f32.mrb[18].mxu1 }
 0xabb   :  { %v2610_v39 = vadd.f32 %v2608_v37, %v2596_v38  ;;  %v2598_v40 = vpop.f32.mrb[19].mxu1 }
 0xabc   :  { %v2611_v41 = vadd.f32 %v2608_v37, %v2598_v40 }
 0xabd   :  { %2613 = vst.msk [vmem:[%s3790_s4] sm:$0x1] %vm2612_vm0, %v2610_v39  ;;  %2616 = vrot.lane.b32.xlu0 %v2610_v39, %s3248_s0 }
 0xabe   :  { %2618 = vrot.lane.b32.xlu1 %v2611_v41, %s3248_s0 }
 0xb2f   :  { %v2617_v42 = vpop.permute.xlu0 %2616 }
 0xb30   :  { %v2619_v29 = vpop.permute.xlu1 %2618 }
 0xb31   :  { %v2620_v43 = vsel %vm1455_vm8, %v2617_v42, %v2619_v29 }
 0xb32   :  { %2623 = vst.msk [vmem:[%s3790_s4] sm:$0x1] %vm2622_vm2, %v2620_v43 }

</bundles_post_ra>
